<compile_context>
chip_gen: v7x
topology: tpu7x:2x2x1
jax: 0.10.0
libtpu: 0.0.40
codegen_flags: <defaults>
</compile_context>

<pallas_src>
import functools
import math

import jax
import jax.numpy as jnp
from jax.experimental import pallas as pl
from jax.experimental.pallas import tpu as pltpu


# ----------------------------------------------------------------------------
# Fused kernel: fc1 -> leaky_relu -> fc2 -> leaky_relu -> classifier
# One grid step processes TB batch rows; weights stay resident across steps.
# ----------------------------------------------------------------------------
def _txtmlp_kernel(x_ref, w1_ref, b1_ref, w2_ref, b2_ref, wc_ref, bc_ref,
                   feat_ref, pred_ref, *, slope):
    # fc1: bf16 x bf16 -> f32 accumulate on the MXU, epilogue in f32
    h = jnp.dot(x_ref[...].astype(jnp.bfloat16), w1_ref[...],
                preferred_element_type=jnp.float32)
    h = h + b1_ref[...]                       # (1, H) broadcasts over rows
    h = jnp.maximum(h, slope * h)             # leaky_relu (slope in (0, 1))

    # fc2 -> feat
    f = jnp.dot(h.astype(jnp.bfloat16), w2_ref[...],
                preferred_element_type=jnp.float32)
    f = f + b2_ref[...]
    f = jnp.maximum(f, slope * f)
    feat_ref[...] = f

    # classifier (columns lane-padded to a multiple of 128) -> predict
    p = jnp.dot(f.astype(jnp.bfloat16), wc_ref[...],
                preferred_element_type=jnp.float32)
    pred_ref[...] = p + bc_ref[...]


def _round_up(n, m):
    return ((n + m - 1) // m) * m


def txtmlp_forward(x, params, *, code_len, num_class, slope=0.2, tb=128):
    """x: (B, txt_bow_len) f32.  Returns (feat (B, code_len), predict (B, num_class))."""
    w1, b1 = params["w1"], params["b1"]       # bf16 weights, f32 biases, padded
    w2, b2 = params["w2"], params["b2"]
    wc, bc = params["wc"], params["bc"]

    B, K = x.shape
    KP = w1.shape[0]                          # padded txt_bow_len
    H = w1.shape[1]                           # hidden (4096 in the real model)
    CP = w2.shape[1]                          # padded code_len
    NP = wc.shape[1]                          # padded num_class

    # Pad batch to a tile multiple and features to the padded K (zeros).
    n_tiles = pl.cdiv(B, tb)
    BP = n_tiles * tb
    x_p = jnp.zeros((BP, KP), x.dtype).at[:B, :K].set(x)

    # Constant-index (VMEM-resident) specs for weights/biases: single-buffered.
    def _const(shape):
        return pl.BlockSpec(shape, lambda i: (0, 0), pipeline_mode=pl.Buffered(1))

    feat_p, pred_p = pl.pallas_call(
        functools.partial(_txtmlp_kernel, slope=slope),
        out_shape=(jax.ShapeDtypeStruct((BP, CP), jnp.float32),
                   jax.ShapeDtypeStruct((BP, NP), jnp.float32)),
        grid=(n_tiles,),
        in_specs=[
            pl.BlockSpec((tb, KP), lambda i: (i, 0)),   # x rows walk the grid
            _const((KP, H)),                            # w1
            _const((1, H)),                             # b1
            _const((H, CP)),                            # w2
            _const((1, CP)),                            # b2
            _const((CP, NP)),                           # wc
            _const((1, NP)),                            # bc
        ],
        out_specs=(pl.BlockSpec((tb, CP), lambda i: (i, 0)),
                   pl.BlockSpec((tb, NP), lambda i: (i, 0))),
        compiler_params=pltpu.CompilerParams(
            dimension_semantics=("parallel",),          # v7x: 2 TCs split batch tiles
            vmem_limit_bytes=56 * 1024 * 1024),         # real shapes need > default scoped limit
    )(x_p, w1, b1, w2, b2, wc, bc)

    return feat_p[:B, :code_len], pred_p[:B, :num_class]


# ----------------------------------------------------------------------------
# Parameter construction (PyTorch nn.Linear default init, deterministic).
# Weights are (in_features, out_features) so the kernel computes y = x @ W + b.
# All feature dims are zero-padded to multiples of 128; weights stored bf16.
# ----------------------------------------------------------------------------
def _lin_params(key, din, dout):
    kw, kb = jax.random.split(key)
    bound = 1.0 / math.sqrt(din)
    W = jax.random.uniform(kw, (din, dout), jnp.float32, -bound, bound)
    b = jax.random.uniform(kb, (1, dout), jnp.float32, -bound, bound)
    return W, b


def make_params(key, txt_bow_len, hidden, code_len, num_class):
    k1, k2, k3 = jax.random.split(key, 3)
    KP = _round_up(txt_bow_len, 128)
    HP = _round_up(hidden, 128)
    CP = _round_up(code_len, 128)
    NP = _round_up(num_class, 128)

    w1, b1 = _lin_params(k1, txt_bow_len, hidden)
    w2, b2 = _lin_params(k2, hidden, code_len)
    wc, bc = _lin_params(k3, code_len, num_class)

    p = {}
    p["w1"] = jnp.zeros((KP, HP), jnp.float32).at[:txt_bow_len, :hidden].set(w1) \
                 .astype(jnp.bfloat16)
    p["b1"] = jnp.zeros((1, HP), jnp.float32).at[:, :hidden].set(b1)
    p["w2"] = jnp.zeros((HP, CP), jnp.float32).at[:hidden, :code_len].set(w2) \
                 .astype(jnp.bfloat16)
    p["b2"] = jnp.zeros((1, CP), jnp.float32).at[:, :code_len].set(b2)
    p["wc"] = jnp.zeros((CP, NP), jnp.float32).at[:code_len, :num_class].set(wc) \
                 .astype(jnp.bfloat16)
    p["bc"] = jnp.zeros((1, NP), jnp.float32).at[:, :num_class].set(bc)
    return p


# ----------------------------------------------------------------------------
# Pure-JAX reference (f32 math over the same bf16-rounded, padded weights)
# ----------------------------------------------------------------------------
def txtmlp_reference(x, params, *, code_len, num_class, slope=0.2):
    K = x.shape[1]
    KP = params["w1"].shape[0]
    x_p = jnp.zeros((x.shape[0], KP), jnp.float32).at[:, :K].set(x)
    h = x_p @ params["w1"].astype(jnp.float32) + params["b1"]
    h = jnp.where(h > 0, h, slope * h)
    f = h @ params["w2"].astype(jnp.float32) + params["b2"]
    f = jnp.where(f > 0, f, slope * f)
    p = f @ params["wc"].astype(jnp.float32) + params["bc"]
    return f[:, :code_len], p[:, :num_class]


# ----------------------------------------------------------------------------
if __name__ == "__main__":
    # Small shapes consistent with TxtMLP (txt_bow_len -> hidden -> code_len -> C),
    # deliberately ragged (300 / 200) to exercise the 128-padding path and a
    # non-tile-multiple batch (200) to exercise batch padding + slice-back.
    BATCH = 200
    TXT_BOW_LEN = 300      # real model: 1386
    HIDDEN = 512           # real model: 4096
    CODE_LEN = 200         # real model: 300
    NUM_CLASS = 24
    TB = 128

    key = jax.random.PRNGKey(0)
    kp, kx = jax.random.split(key)
    params = make_params(kp, TXT_BOW_LEN, HIDDEN, CODE_LEN, NUM_CLASS)
    x = jax.random.normal(kx, (BATCH, TXT_BOW_LEN), jnp.float32)

    fwd = jax.jit(functools.partial(txtmlp_forward, code_len=CODE_LEN,
                                    num_class=NUM_CLASS, tb=TB))
    feat, predict = jax.block_until_ready(fwd(x, params))

    # shape / sanity checks
    assert feat.shape == (BATCH, CODE_LEN)
    assert predict.shape == (BATCH, NUM_CLASS)
    assert bool(jnp.all(jnp.isfinite(feat)))
    assert bool(jnp.all(jnp.isfinite(predict)))

    # numerical check against the pure-JAX reference (bf16 matmul inputs -> loose tol)
    feat_ref, pred_ref = txtmlp_reference(x, params, code_len=CODE_LEN,
                                          num_class=NUM_CLASS)
    assert bool(jnp.allclose(feat, feat_ref, rtol=2e-2, atol=2e-2))
    assert bool(jnp.allclose(predict, pred_ref, rtol=2e-2, atol=2e-2))

    print("KERNEL_OK")
</pallas_src>

<mosaic_0001>
module attributes {stable_mosaic.version = 11 : i64} {
  func.func @_txtmlp_kernel(%arg0: i32, %arg1: memref<128x384xf32, #tpu.memory_space<vmem>>, %arg2: memref<384x512xbf16, #tpu.memory_space<vmem>>, %arg3: memref<1x512xf32, #tpu.memory_space<vmem>>, %arg4: memref<512x256xbf16, #tpu.memory_space<vmem>>, %arg5: memref<1x256xf32, #tpu.memory_space<vmem>>, %arg6: memref<256x128xbf16, #tpu.memory_space<vmem>>, %arg7: memref<1x128xf32, #tpu.memory_space<vmem>>, %arg8: memref<128x256xf32, #tpu.memory_space<vmem>>, %arg9: memref<128x128xf32, #tpu.memory_space<vmem>>) attributes {dimension_semantics = [#tpu.dimension_semantics<parallel>], iteration_bounds = array<i64: 2>, scalar_prefetch = 0 : i64, scratch_operands = 0 : i64, tpu.core_type = #tpu.core_type<tc>, window_params = [{transform_indices = @transform_0, window_bounds = array<i64: 128, 384>}, {pipeline_mode = #tpu.pipeline_mode<synchronous>, transform_indices = @transform_1, window_bounds = array<i64: 384, 512>}, {pipeline_mode = #tpu.pipeline_mode<synchronous>, transform_indices = @transform_2, window_bounds = array<i64: 1, 512>}, {pipeline_mode = #tpu.pipeline_mode<synchronous>, transform_indices = @transform_3, window_bounds = array<i64: 512, 256>}, {pipeline_mode = #tpu.pipeline_mode<synchronous>, transform_indices = @transform_4, window_bounds = array<i64: 1, 256>}, {pipeline_mode = #tpu.pipeline_mode<synchronous>, transform_indices = @transform_5, window_bounds = array<i64: 256, 128>}, {pipeline_mode = #tpu.pipeline_mode<synchronous>, transform_indices = @transform_6, window_bounds = array<i64: 1, 128>}, {transform_indices = @transform_7, window_bounds = array<i64: 128, 256>}, {transform_indices = @transform_8, window_bounds = array<i64: 128, 128>}]} {
    %c0 = arith.constant 0 : index
    %c0_0 = arith.constant 0 : index
    %0 = vector.load %arg1[%c0, %c0_0] : memref<128x384xf32, #tpu.memory_space<vmem>>, vector<128x384xf32>
    %1 = arith.truncf %0 : vector<128x384xf32> to vector<128x384xbf16>
    %c0_1 = arith.constant 0 : index
    %c0_2 = arith.constant 0 : index
    %2 = vector.load %arg2[%c0_1, %c0_2] : memref<384x512xbf16, #tpu.memory_space<vmem>>, vector<384x512xbf16>
    %cst = arith.constant dense<0.000000e+00> : vector<128x512xf32>
    %3 = tpu.matmul %1, %2, %cst {dimension_numbers = #tpu.dot_dimension_numbers<[1], [0], [0], [1], [0, 0, 1, 1], [], []>} : vector<128x384xbf16>, vector<384x512xbf16>, vector<128x512xf32> -> vector<128x512xf32>
    %c0_3 = arith.constant 0 : index
    %c0_4 = arith.constant 0 : index
    %4 = vector.load %arg3[%c0_3, %c0_4] : memref<1x512xf32, #tpu.memory_space<vmem>>, vector<1x512xf32>
    %5 = vector.broadcast %4 : vector<1x512xf32> to vector<128x512xf32>
    %6 = arith.addf %3, %5 : vector<128x512xf32>
    %cst_5 = arith.constant 2.000000e-01 : f32
    %7 = vector.broadcast %cst_5 : f32 to vector<128x512xf32>
    %8 = arith.mulf %7, %6 : vector<128x512xf32>
    %9 = arith.maximumf %6, %8 : vector<128x512xf32>
    %10 = arith.truncf %9 : vector<128x512xf32> to vector<128x512xbf16>
    %c0_6 = arith.constant 0 : index
    %c0_7 = arith.constant 0 : index
    %11 = vector.load %arg4[%c0_6, %c0_7] : memref<512x256xbf16, #tpu.memory_space<vmem>>, vector<512x256xbf16>
    %cst_8 = arith.constant dense<0.000000e+00> : vector<128x256xf32>
    %12 = tpu.matmul %10, %11, %cst_8 {dimension_numbers = #tpu.dot_dimension_numbers<[1], [0], [0], [1], [0, 0, 1, 1], [], []>} : vector<128x512xbf16>, vector<512x256xbf16>, vector<128x256xf32> -> vector<128x256xf32>
    %c0_9 = arith.constant 0 : index
    %c0_10 = arith.constant 0 : index
    %13 = vector.load %arg5[%c0_9, %c0_10] : memref<1x256xf32, #tpu.memory_space<vmem>>, vector<1x256xf32>
    %14 = vector.broadcast %13 : vector<1x256xf32> to vector<128x256xf32>
    %15 = arith.addf %12, %14 : vector<128x256xf32>
    %cst_11 = arith.constant 2.000000e-01 : f32
    %16 = vector.broadcast %cst_11 : f32 to vector<128x256xf32>
    %17 = arith.mulf %16, %15 : vector<128x256xf32>
    %18 = arith.maximumf %15, %17 : vector<128x256xf32>
    %c0_12 = arith.constant 0 : index
    %c0_13 = arith.constant 0 : index
    %19 = vector.load %arg8[%c0_12, %c0_13] : memref<128x256xf32, #tpu.memory_space<vmem>>, vector<128x256xf32>
    tpu.vector_store %arg8[%c0_12, %c0_13], %18 {strides = array<i32>} : memref<128x256xf32, #tpu.memory_space<vmem>>, vector<128x256xf32>,
    %20 = arith.truncf %18 : vector<128x256xf32> to vector<128x256xbf16>
    %c0_14 = arith.constant 0 : index
    %c0_15 = arith.constant 0 : index
    %21 = vector.load %arg6[%c0_14, %c0_15] : memref<256x128xbf16, #tpu.memory_space<vmem>>, vector<256x128xbf16>
    %cst_16 = arith.constant dense<0.000000e+00> : vector<128x128xf32>
    %22 = tpu.matmul %20, %21, %cst_16 {dimension_numbers = #tpu.dot_dimension_numbers<[1], [0], [0], [1], [0, 0, 1, 1], [], []>} : vector<128x256xbf16>, vector<256x128xbf16>, vector<128x128xf32> -> vector<128x128xf32>
    %c0_17 = arith.constant 0 : index
    %c0_18 = arith.constant 0 : index
    %23 = vector.load %arg7[%c0_17, %c0_18] : memref<1x128xf32, #tpu.memory_space<vmem>>, vector<1x128xf32>
    %24 = vector.broadcast %23 : vector<1x128xf32> to vector<128x128xf32>
    %25 = arith.addf %22, %24 : vector<128x128xf32>
    %c0_19 = arith.constant 0 : index
    %c0_20 = arith.constant 0 : index
    %26 = vector.load %arg9[%c0_19, %c0_20] : memref<128x128xf32, #tpu.memory_space<vmem>>, vector<128x128xf32>
    tpu.vector_store %arg9[%c0_19, %c0_20], %25 {strides = array<i32>} : memref<128x128xf32, #tpu.memory_space<vmem>>, vector<128x128xf32>,
    return
  }
  func.func @transform_0(%arg0: i32) -> (i32, i32) {
    %c0_i32 = arith.constant 0 : i32
    %c0_i32_0 = arith.constant 0 : i32
    return %arg0, %c0_i32 : i32, i32
  }
  func.func @transform_1(%arg0: i32) -> (i32, i32) {
    %c0_i32 = arith.constant 0 : i32
    %c0_i32_0 = arith.constant 0 : i32
    %c0_i32_1 = arith.constant 0 : i32
    return %c0_i32, %c0_i32_0 : i32, i32
  }
  func.func @transform_2(%arg0: i32) -> (i32, i32) {
    %c0_i32 = arith.constant 0 : i32
    %c0_i32_0 = arith.constant 0 : i32
    %c0_i32_1 = arith.constant 0 : i32
    return %c0_i32, %c0_i32_0 : i32, i32
  }
  func.func @transform_3(%arg0: i32) -> (i32, i32) {
    %c0_i32 = arith.constant 0 : i32
    %c0_i32_0 = arith.constant 0 : i32
    %c0_i32_1 = arith.constant 0 : i32
    return %c0_i32, %c0_i32_0 : i32, i32
  }
  func.func @transform_4(%arg0: i32) -> (i32, i32) {
    %c0_i32 = arith.constant 0 : i32
    %c0_i32_0 = arith.constant 0 : i32
    %c0_i32_1 = arith.constant 0 : i32
    return %c0_i32, %c0_i32_0 : i32, i32
  }
  func.func @transform_5(%arg0: i32) -> (i32, i32) {
    %c0_i32 = arith.constant 0 : i32
    %c0_i32_0 = arith.constant 0 : i32
    %c0_i32_1 = arith.constant 0 : i32
    return %c0_i32, %c0_i32_0 : i32, i32
  }
  func.func @transform_6(%arg0: i32) -> (i32, i32) {
    %c0_i32 = arith.constant 0 : i32
    %c0_i32_0 = arith.constant 0 : i32
    %c0_i32_1 = arith.constant 0 : i32
    return %c0_i32, %c0_i32_0 : i32, i32
  }
  func.func @transform_7(%arg0: i32) -> (i32, i32) {
    %c0_i32 = arith.constant 0 : i32
    %c0_i32_0 = arith.constant 0 : i32
    return %arg0, %c0_i32 : i32, i32
  }
  func.func @transform_8(%arg0: i32) -> (i32, i32) {
    %c0_i32 = arith.constant 0 : i32
    %c0_i32_0 = arith.constant 0 : i32
    return %arg0, %c0_i32 : i32, i32
  }
}

</mosaic_0001>

<bundles_post_ra>
// kernel: txtmlp_forward.1
= control target key start
LH: loop header
LB: loop body
LE: loop exit
PB: predicated region body
PF: predicated region fallthrough
CT: control target
= control target key end

     0   :  { %14 = vsyncpa [#allocation3], 0  ;;  %s3546_s27 = smov 0   ;;  %s4566_s0 = inlined_call_operand.vmem [shape: f32[256,384], index: 0, kind: input, shape index: {}]   ;;  %s4567_s1 = inlined_call_operand.vmem [shape: bf16[384,512], index: 1, kind: input, shape index: {}]   ;;  %s4568_s2 = inlined_call_operand.vmem [shape: f32[1,512], index: 2, kind: input, shape index: {}]   ;;  %s4569_s3 = inlined_call_operand.vmem [shape: bf16[512,256], index: 3, kind: input, shape index: {}]   ;;  %s4570_s4 = inlined_call_operand.vmem [shape: f32[1,256], index: 4, kind: input, shape index: {}]   ;;  %s4571_s5 = inlined_call_operand.hbm [shape: bf16[256,128], index: 5, kind: input, shape index: {}]   ;;  %s4572_s6 = inlined_call_operand.vmem [shape: f32[1,128], index: 6, kind: input, shape index: {}]   ;;  %s4573_s7 = inlined_call_operand.vmem [shape: f32[256,256], index: 7, kind: output, shape index: {0}]   ;;  %s4574_s8 = inlined_call_operand.vmem [shape: f32[256,128], index: 8, kind: output, shape index: {1}]  }
   0x1 LB: > { %s2712_s28 = sadd.s32 4294967295, %s3495_s27   ;;  %p2714_p0 = scmp.ge.s32.totalorder %s3495_s27, 1  ;;  %s3495_s27 = sphi %s3546_s27, %s20_s27  }
   0x2   : > { %p229_p1 = scmp.lt.s32.totalorder %s3495_s27, 3  ;;  %s3497_s29 = smov [#allocation2]  }
   0x3   : > { %s253_s30 = sshll.u32 %s3497_s29, 4  ;;  %p3560_p3 = scmp.eq.s32.totalorder %s2712_s28, 0  ;;  %s254_s30 = int_to_ptr.vmem [resolvable:$true] %s253_s30 }
   0x4   : > { %p3554_p2 = pnand %p2714_p0, %p229_p1  ;;  %s3457_s14 = scalar_lea.hbm %s4571_s5, 2048 }
   0x5   : > { %s4579_s10 = scalar_select %p3560_p3, 1, 0 }
   0x6   : > { %s4578_s9 = scalar_select %p3554_p2, 1, 0 }
   0x7   : > { %p3183_p4 = pneg %p3554_p2  ;;  %p3458_p6 = scmp.ne.s32.totalorder %s4571_s5, %s3457_s14 }
   0x8   : > { %p3464_p10 = scmp.lt.u32.totalorder %s3457_s14, %s4571_s5 }
   0x9   : > { %p3568_p5 = pnand %p3560_p3, %p3183_p4 }
   0xb   : > { %p3459_p7 = pneg %p3568_p5 }
   0xd   : > { %p3460_p8 = pnand %p3459_p7, %p3458_p6 }
   0xf   : > { %p3461_p9 = pneg %p3460_p8 }
  0x11   : > { %p3466_p11 = pnand %p3464_p10, %p3461_p9 }
  0x13   : > { %3469 = shalt.err (!%p3466_p11)
}
  0x14   : > { %s3470_s19 = scalar_lea.vmem %s254_s30, 2048  ;;  %p3478_p1 = scmp.lt.s32.totalorder %s254_s30, %s254_s30 }
  0x15   : > { %p3471_p12 = scmp.ne.s32.totalorder %s254_s30, %s3470_s19  ;;  %p3479_p4 = scmp.lt.s32.totalorder %s3470_s19, %s3470_s19 }
  0x17   : > { %p3473_p13 = pnand %p3471_p12, %p3459_p7  ;;  %p3480_p3 = por %p3479_p4, %p3478_p1 }
  0x19   : > { %p3474_p0 = pneg %p3473_p13 }
  0x1b   : > { %p3481_p2 = pnand %p3480_p3, %p3474_p0 }
  0x1d   : > { %3484 = shalt.err (!%p3481_p2)
}
  0x1e   : > { %s3498_s20 = smov 64   ;;  %s3499_s21 = smov 4  }
  0x1f   : > { %3186 = dma.hbm_to_vmem [thread:$0]  (!%p3568_p5), %s4571_s5, 2048, %s254_s30, [#allocation3], %s3498_s20, %s3498_s20, %s3499_s21  }
  0x20   : > { %p4581_p6 = scmp.ne.s32.totalorder %s4578_s9, 0 }
  0x21   : > { %p4582_p8 = scmp.ne.s32.totalorder (!%p4581_p6), %s4579_s10, 0 }
  0x22   : > { %282 = sbr.rel (%p4581_p6) target bundleno = 928 (0x3a0), region = 48 }
  0x29   : > { %3490 = dma.done.wait (%p4582_p8), [#allocation3], 2048  }
  0x2a   : > { %3492 = vsyncadd (%p4582_p8), [#allocation3], 4294965248  ;;  %v3500_v0 = vmov 0   ;;  %v3201_v1 = vld [vmem:[%s4567_s1 + $0x4] ss:$16 sps:$4 sm:$0xff]   ;;  %s2719_s10 = sshll.u32 %s2712_s28, 4 }
  0x2b   : > { %1159 = vmatprep.mubr.bf16.mxu1 %v3500_v0  ;;  %v3203_v2 = vld [vmem:[%s4567_s1 + $0x204] ss:$16 sps:$4 sm:$0xff]   ;;  %1014 = vmatprep.subr.bf16.mxu0 %v3201_v1  ;;  %v3205_v3 = vld [vmem:[%s4567_s1] ss:$16 sps:$4 sm:$0xff]   ;;  %p324_p2 = scmp.lt.s32.totalorder %s2719_s10, 31 }
  0x2c   : > { %v3206_v4 = vld [vmem:[%s4567_s1 + $0x200] ss:$16 sps:$4 sm:$0xff]   ;;  %1127 = vmatprep.subr.bf16.mxu1 %v3203_v2  ;;  %v3207_v5 = vld [vmem:[%s4567_s1 + $0x24] ss:$16 sps:$4 sm:$0xff]   ;;  %1015 = vmatpush1.bf16.msra.mxu0 %v3205_v3  ;;  %v3253_v36 = vld [vmem:[%s4567_s1 + $0xc] ss:$16 sps:$4 sm:$0xff]  }
  0x2d   : > { %1128 = vmatpush1.bf16.msra.mxu1 %v3206_v4  ;;  %v3209_v6 = vld [vmem:[%s4567_s1 + $0x224] ss:$16 sps:$4 sm:$0xff]   ;;  %v3211_v7 = vld [vmem:[%s4567_s1 + $0x20] ss:$16 sps:$4 sm:$0xff]   ;;  %1016 = vmatprep.subr.bf16.mxu0 %v3207_v5  ;;  %s4584_s10 = smov (!%p324_p2, %s2719_s10), 31 }
  0x2e   : > { %v3212_v8 = vld [vmem:[%s4567_s1 + $0x220] ss:$16 sps:$4 sm:$0xff]   ;;  %1129 = vmatprep.subr.bf16.mxu1 %v3209_v6  ;;  %v3213_v9 = vld [vmem:[%s4567_s1 + $0x44] ss:$16 sps:$4 sm:$0xff]   ;;  %s3178_s17 = smul.u32 24, %s4584_s10  ;;  %s2905_s20 = sshll.u32 %s4584_s10, 4 }
  0x2f   : > { %v3215_v10 = vld [vmem:[%s4567_s1 + $0x244] ss:$16 sps:$4 sm:$0xff]   ;;  %v3217_v11 = vld [vmem:[%s4567_s1 + $0x40] ss:$16 sps:$4 sm:$0xff]   ;;  %v3251_v38 = vld [vmem:[%s4567_s1 + $0x8] ss:$16 sps:$4 sm:$0xff]   ;;  %s4457_s22 = scalar_lea.vmem %s4573_s7, %s2905_s20 }
  0x30   : > { %v3218_v12 = vld [vmem:[%s4567_s1 + $0x240] ss:$16 sps:$4 sm:$0xff]   ;;  %1017 = vmatpush1.bf16.msra.mxu0 %v3211_v7  ;;  %v3219_v13 = vld [vmem:[%s4567_s1 + $0x64] ss:$16 sps:$4 sm:$0xff]   ;;  %s3693_s29 = scalar_lea.vmem %s4566_s0, %s3178_s17  ;;  %v3259_v41 = vld [vmem:[%s4567_s1 + $0x2c] ss:$16 sps:$4 sm:$0xff]  }
  0x31   : > { %1130 = vmatpush1.bf16.msra.mxu1 %v3212_v8  ;;  %1018 = vmatprep.subr.bf16.mxu0 %v3213_v9  ;;  %v3221_v14 = vld [vmem:[%s4567_s1 + $0x264] ss:$16 sps:$4 sm:$0xff]   ;;  %v3223_v15 = vld [vmem:[%s4567_s1 + $0x60] ss:$16 sps:$4 sm:$0xff]   ;;  %v349_v35 = vld [vmem:[%s3693_s29 + $0x28] sm:$0xff]  ;;  %s2725_s23 = sshll.u32 %s4584_s10, 3 }
  0x32   : > { %1131 = vmatprep.subr.bf16.mxu1 %v3215_v10  ;;  %v3224_v16 = vld [vmem:[%s4567_s1 + $0x260] ss:$16 sps:$4 sm:$0xff]   ;;  %v3225_v17 = vld [vmem:[%s4567_s1 + $0x84] ss:$16 sps:$4 sm:$0xff]   ;;  %v3257_v42 = vld [vmem:[%s4567_s1 + $0x28] ss:$16 sps:$4 sm:$0xff]   ;;  %s4529_s30 = scalar_lea.vmem %s4574_s8, %s2725_s23 }
  0x33   : > { %v3227_v18 = vld [vmem:[%s4567_s1 + $0x284] ss:$16 sps:$4 sm:$0xff]   ;;  %v3229_v19 = vld [vmem:[%s4567_s1 + $0x80] ss:$16 sps:$4 sm:$0xff]   ;;  %v355_v46 = vld [vmem:[%s3693_s29 + $0x58] sm:$0xff] }
  0x34   : > { %1019 = vmatpush1.bf16.msra.mxu0 %v3217_v11  ;;  %v3230_v20 = vld [vmem:[%s4567_s1 + $0x280] ss:$16 sps:$4 sm:$0xff]   ;;  %v3231_v21 = vld [vmem:[%s4567_s1 + $0xa4] ss:$16 sps:$4 sm:$0xff]   ;;  %v3265_v47 = vld [vmem:[%s4567_s1 + $0x4c] ss:$16 sps:$4 sm:$0xff]  }
  0x35   : > { %1132 = vmatpush1.bf16.msra.mxu1 %v3218_v12  ;;  %1020 = vmatprep.subr.bf16.mxu0 %v3219_v13  ;;  %v3233_v22 = vld [vmem:[%s4567_s1 + $0x2a4] ss:$16 sps:$4 sm:$0xff]   ;;  %v3235_v23 = vld [vmem:[%s4567_s1 + $0xa0] ss:$16 sps:$4 sm:$0xff]   ;;  %v3263_v49 = vld [vmem:[%s4567_s1 + $0x48] ss:$16 sps:$4 sm:$0xff]  }
  0x36   : > { %1133 = vmatprep.subr.bf16.mxu1 %v3221_v14  ;;  %v3236_v24 = vld [vmem:[%s4567_s1 + $0x2a0] ss:$16 sps:$4 sm:$0xff]   ;;  %v3237_v25 = vld [vmem:[%s4567_s1 + $0xc4] ss:$16 sps:$4 sm:$0xff]   ;;  %v3271_v52 = vld [vmem:[%s4567_s1 + $0x6c] ss:$16 sps:$4 sm:$0xff]  }
  0x37   : > { %v3239_v26 = vld [vmem:[%s4567_s1 + $0x2c4] ss:$16 sps:$4 sm:$0xff]   ;;  %v3241_v27 = vld [vmem:[%s4567_s1 + $0xc0] ss:$16 sps:$4 sm:$0xff]   ;;  %v3269_v53 = vld [vmem:[%s4567_s1 + $0x68] ss:$16 sps:$4 sm:$0xff]  }
  0x38   : > { %1021 = vmatpush1.bf16.msra.mxu0 %v3223_v15  ;;  %v3242_v28 = vld [vmem:[%s4567_s1 + $0x2c0] ss:$16 sps:$4 sm:$0xff]   ;;  %v3243_v29 = vld [vmem:[%s4567_s1 + $0xe4] ss:$16 sps:$4 sm:$0xff]   ;;  %v361_v57 = vld [vmem:[%s3693_s29 + $0x88] sm:$0xff] }
  0x39   : > { %1134 = vmatpush1.bf16.msra.mxu1 %v3224_v16  ;;  %1022 = vmatprep.subr.bf16.mxu0 %v3225_v17  ;;  %v3245_v30 = vld [vmem:[%s4567_s1 + $0x2e4] ss:$16 sps:$4 sm:$0xff]   ;;  %v3247_v31 = vld [vmem:[%s4567_s1 + $0xe0] ss:$16 sps:$4 sm:$0xff]   ;;  %v3277_v58 = vld [vmem:[%s4567_s1 + $0x8c] ss:$16 sps:$4 sm:$0xff]  }
  0x3a   : > { %1135 = vmatprep.subr.bf16.mxu1 %v3227_v18  ;;  %v3248_v32 = vld [vmem:[%s4567_s1 + $0x2e0] ss:$16 sps:$4 sm:$0xff]   ;;  %v3249_v33 = vld [vmem:[%s4567_s1 + $0x104] ss:$16 sps:$4 sm:$0xff]   ;;  %v345_v59 = vld [vmem:[%s3693_s29 + $0x8] sm:$0xff] }
  0x3b   : > { %v346_v34 = vld [vmem:[%s3693_s29 + $0x10] sm:$0xff]  ;;  %v352_v45 = vld [vmem:[%s3693_s29 + $0x40] sm:$0xff]  ;;  %v3275_v63 = vld [vmem:[%s4567_s1 + $0x88] ss:$16 sps:$4 sm:$0xff]  }
  0x3c   : > { %1023 = vmatpush1.bf16.msra.mxu0 %v3229_v19  ;;  %v3709_v37 = vpack.c.bf16 %v349_v35, %v346_v34  ;;  %v3254_v39 = vld [vmem:[%s4567_s1 + $0x100] ss:$16 sps:$4 sm:$0xff]   ;;  %v3255_v40 = vld [vmem:[%s4567_s1 + $0x124] ss:$16 sps:$4 sm:$0xff]   ;;  %v3739_v48 = vpack.c.bf16 %v355_v46, %v352_v45  ;;  %v3283_v3 = vld [vmem:[%s4567_s1 + $0xac] ss:$16 sps:$4 sm:$0xff]  }
  0x3d   : > { %1136 = vmatpush1.bf16.msra.mxu1 %v3230_v20  ;;  %1024 = vmatprep.subr.bf16.mxu0 %v3231_v21  ;;  %v3260_v43 = vld [vmem:[%s4567_s1 + $0x120] ss:$16 sps:$4 sm:$0xff]   ;;  %v3261_v44 = vld [vmem:[%s4567_s1 + $0x144] ss:$16 sps:$4 sm:$0xff]   ;;  %v3281_v4 = vld [vmem:[%s4567_s1 + $0xa8] ss:$16 sps:$4 sm:$0xff]  }
  0x3e   : > { %1137 = vmatprep.subr.bf16.mxu1 %v3233_v22  ;;  %v3266_v50 = vld [vmem:[%s4567_s1 + $0x140] ss:$16 sps:$4 sm:$0xff]   ;;  %v3267_v51 = vld [vmem:[%s4567_s1 + $0x164] ss:$16 sps:$4 sm:$0xff]   ;;  %v367_v8 = vld [vmem:[%s3693_s29 + $0xb8] sm:$0xff] }
  0x3f   : > { %v3272_v54 = vld [vmem:[%s4567_s1 + $0x160] ss:$16 sps:$4 sm:$0xff]   ;;  %v3273_v55 = vld [vmem:[%s4567_s1 + $0x184] ss:$16 sps:$4 sm:$0xff]   ;;  %v3289_v9 = vld [vmem:[%s4567_s1 + $0xcc] ss:$16 sps:$4 sm:$0xff]  }
  0x40   : > { %1025 = vmatpush1.bf16.msra.mxu0 %v3235_v23  ;;  %v358_v56 = vld [vmem:[%s3693_s29 + $0x70] sm:$0xff]  ;;  %v348_v60 = vld [vmem:[%s3693_s29 + $0x20] sm:$0xff]  ;;  %v3287_v11 = vld [vmem:[%s4567_s1 + $0xc8] ss:$16 sps:$4 sm:$0xff]  }
  0x41   : > { %1138 = vmatpush1.bf16.msra.mxu1 %v3236_v24  ;;  %1026 = vmatprep.subr.bf16.mxu0 %v3237_v25  ;;  %v3771_v61 = vpack.c.bf16 %v348_v60, %v345_v59  ;;  %v3773_v62 = vpack.c.bf16 %v361_v57, %v358_v56  ;;  %v3278_v1 = vld [vmem:[%s4567_s1 + $0x180] ss:$16 sps:$4 sm:$0xff]   ;;  %v3279_v2 = vld [vmem:[%s4567_s1 + $0x1a4] ss:$16 sps:$4 sm:$0xff]   ;;  %v3295_v14 = vld [vmem:[%s4567_s1 + $0xec] ss:$16 sps:$4 sm:$0xff]  }
  0x42   : > { %1139 = vmatprep.subr.bf16.mxu1 %v3239_v26  ;;  %v3284_v5 = vld [vmem:[%s4567_s1 + $0x1a0] ss:$16 sps:$4 sm:$0xff]   ;;  %v3285_v6 = vld [vmem:[%s4567_s1 + $0x1c4] ss:$16 sps:$4 sm:$0xff]   ;;  %v3293_v15 = vld [vmem:[%s4567_s1 + $0xe8] ss:$16 sps:$4 sm:$0xff]  }
  0x43   : > { %1046 = vmatprep.mubr.bf16.mxu0 %v3771_v61  ;;  %v364_v7 = vld [vmem:[%s3693_s29 + $0xa0] sm:$0xff]  ;;  %v347_v18 = vld [vmem:[%s3693_s29 + $0x18] sm:$0xff]  ;;  %v370_v19 = vld [vmem:[%s3693_s29 + $0xd0] sm:$0xff] }
  0x44   : > { %1027 = vmatpush1.bf16.msra.mxu0 %v3241_v27  ;;  %v3804_v10 = vpack.c.bf16 %v367_v8, %v364_v7  ;;  %v3290_v12 = vld [vmem:[%s4567_s1 + $0x1c0] ss:$16 sps:$4 sm:$0xff]   ;;  %v3291_v13 = vld [vmem:[%s4567_s1 + $0x1e4] ss:$16 sps:$4 sm:$0xff]   ;;  %v373_v20 = vld [vmem:[%s3693_s29 + $0xe8] sm:$0xff] }
  0x45   : > { %1140 = vmatpush1.bf16.msra.mxu1 %v3242_v28  ;;  %1028 = vmatprep.subr.bf16.mxu0 %v3243_v29  ;;  %v3296_v16 = vld [vmem:[%s4567_s1 + $0x1e0] ss:$16 sps:$4 sm:$0xff]   ;;  %v3299_v21 = vld [vmem:[%s4567_s1 + $0x10c] ss:$16 sps:$4 sm:$0xff]   ;;  %v3837_v25 = vpack.c.bf16 %v373_v20, %v370_v19  ;;  %v3297_v26 = vld [vmem:[%s4567_s1 + $0x108] ss:$16 sps:$4 sm:$0xff]  }
  0x46   : > { %1141 = vmatprep.subr.bf16.mxu1 %v3245_v30  ;;  %v344_v17 = vld [vmem:[%s3693_s29] sm:$0xff]  ;;  %v351_v22 = vld [vmem:[%s3693_s29 + $0x38] sm:$0xff]  ;;  %v354_v23 = vld [vmem:[%s3693_s29 + $0x50] sm:$0xff] }
  0x47   : > { %v3835_v24 = vpack.c.bf16 %v347_v18, %v344_v17  ;;  %v3842_v27 = vpack.c.bf16 %v354_v23, %v351_v22  ;;  %v3302_v28 = vld [vmem:[%s4567_s1 + $0x12c] ss:$16 sps:$4 sm:$0xff]   ;;  %v3300_v29 = vld [vmem:[%s4567_s1 + $0x128] ss:$16 sps:$4 sm:$0xff]   ;;  %v350_v30 = vld [vmem:[%s3693_s29 + $0x30] sm:$0xff] }
  0x48   : > { %1029 = vmatpush1.bf16.msra.mxu0 %v3247_v31  ;;  %v353_v31 = vld [vmem:[%s3693_s29 + $0x48] sm:$0xff]  ;;  %v359_v45 = vld [vmem:[%s3693_s29 + $0x78] sm:$0xff]  ;;  %v382_v46 = vld [vmem:[%s3693_s29 + $0x130] sm:$0xff] }
  0x49   : > { %1142 = vmatpush1.bf16.msra.mxu1 %v3248_v32  ;;  %1030 = vmatprep.subr.bf16.mxu0 %v3249_v33  ;;  %v376_v32 = vld [vmem:[%s3693_s29 + $0x100] sm:$0xff]  ;;  %v379_v33 = vld [vmem:[%s3693_s29 + $0x118] sm:$0xff]  ;;  %v357_v35 = vld [vmem:[%s3693_s29 + $0x68] sm:$0xff] }
  0x4a   : > { %1240 = vmatprep.subr.bf16.mxu1 %v3253_v36  ;;  %v3305_v34 = vld [vmem:[%s4567_s1 + $0x14c] ss:$16 sps:$4 sm:$0xff]   ;;  %v360_v36 = vld [vmem:[%s3693_s29 + $0x80] sm:$0xff]  ;;  %v3312_v57 = vld [vmem:[%s4567_s1 + $0x1a8] ss:$16 sps:$4 sm:$0xff]  }
  0x4b   : > { %v365_v59 = vld [vmem:[%s3693_s29 + $0xa8] sm:$0xff]  ;;  %v388_v60 = vld [vmem:[%s3693_s29 + $0x160] sm:$0xff]  ;;  %v375_v17 = vld [vmem:[%s3693_s29 + $0xf8] sm:$0xff] }
  0x4c   : > { %1160 = vmatmul.mubr.bf16.vlgmr.msra.gmra.mrb[0].mxu1 %v3709_v37  ;;  %1031 = vmatpush1.bf16.msra.mxu0 %v3254_v39  ;;  %v3865_v39 = vpack.c.bf16 %v379_v33, %v376_v32  ;;  %v3320_v7 = vld [vmem:[%s4567_s1 + $0x1ec] ss:$16 sps:$4 sm:$0xff]   ;;  %v378_v18 = vld [vmem:[%s3693_s29 + $0x110] sm:$0xff]  ;;  %v3321_v19 = vld [vmem:[%s4567_s1 + $0x208] ss:$16 sps:$4 sm:$0xff]  }
  0x4d   : > { %1241 = vmatpush1.bf16.msra.mxu1 %v3251_v38  ;;  %1032 = vmatprep.subr.bf16.mxu0 %v3255_v40  ;;  %v3863_v38 = vpack.c.bf16 %v353_v31, %v350_v30  ;;  %v3303_v40 = vld [vmem:[%s4567_s1 + $0x148] ss:$16 sps:$4 sm:$0xff]   ;;  %v3353_v23 = vld [vmem:[%s4569_s3 + $0x24] ss:$8 sps:$4 sm:$0xff]  }
  0x4e   : > { %1242 = vmatprep.subr.bf16.mxu1 %v3259_v41  ;;  %1169 = vmatprep.mubr.bf16.mxu1 %v3500_v0  ;;  %v3870_v41 = vpack.c.bf16 %v360_v36, %v357_v35  ;;  %v3348_v22 = vld [vmem:[%s4569_s3 + $0x10] ss:$8 sps:$4 sm:$0xff]   ;;  %v381_v30 = vld [vmem:[%s3693_s29 + $0x128] sm:$0xff]  ;;  %v384_v31 = vld [vmem:[%s3693_s29 + $0x140] sm:$0xff] }
  0x4f   : > { %v3329_v32 = vld [vmem:[%s4567_s1 + $0x24c] ss:$16 sps:$4 sm:$0xff]   ;;  %v3351_v33 = vld [vmem:[%s4569_s3 + $0x20] ss:$8 sps:$4 sm:$0xff]   ;;  %v3995_v36 = vpack.c.bf16 %v384_v31, %v381_v30 }
  0x50   : > { %1033 = vmatpush1.bf16.msra.mxu0 %v3260_v43  ;;  %v3306_v43 = vld [vmem:[%s4567_s1 + $0x168] ss:$16 sps:$4 sm:$0xff]   ;;  %v3356_v35 = vld [vmem:[%s4569_s3 + $0x34] ss:$8 sps:$4 sm:$0xff]  }
  0x51   : > { %1243 = vmatpush1.bf16.msra.mxu1 %v3257_v42  ;;  %1034 = vmatprep.subr.bf16.mxu0 %v3261_v44  ;;  %v3308_v42 = vld [vmem:[%s4567_s1 + $0x16c] ss:$16 sps:$4 sm:$0xff]   ;;  %v356_v44 = vld [vmem:[%s3693_s29 + $0x60] sm:$0xff] }
  0x52   : > { %1244 = vmatprep.subr.bf16.mxu1 %v3265_v47  ;;  %v385_v47 = vld [vmem:[%s3693_s29 + $0x148] sm:$0xff] }
  0x54   : > { %1170 = vmatmul.mubr.bf16.gmra.mrb[4].mxu1 %v3739_v48  ;;  %1035 = vmatpush1.bf16.msra.mxu0 %v3266_v50  ;;  %v363_v50 = vld [vmem:[%s3693_s29 + $0x98] sm:$0xff] }
  0x55   : > { %1245 = vmatpush1.bf16.msra.mxu1 %v3263_v49  ;;  %1036 = vmatprep.subr.bf16.mxu0 %v3267_v51  ;;  %v3311_v49 = vld [vmem:[%s4567_s1 + $0x18c] ss:$16 sps:$4 sm:$0xff]   ;;  %v366_v51 = vld [vmem:[%s3693_s29 + $0xb0] sm:$0xff] }
  0x56   : > { %1246 = vmatprep.subr.bf16.mxu1 %v3271_v52  ;;  %1179 = vmatprep.mubr.bf16.mxu1 %v3500_v0  ;;  %v3891_v52 = vpack.c.bf16 %v359_v45, %v356_v44  ;;  %v3901_v56 = vpack.c.bf16 %v366_v51, %v363_v50  ;;  %v383_v44 = vld [vmem:[%s3693_s29 + $0x138] sm:$0xff]  ;;  %v3357_v50 = vld [vmem:[%s4569_s3 + $0x40] ss:$8 sps:$4 sm:$0xff]  }
  0x57   : > { %v387_v45 = vld [vmem:[%s3693_s29 + $0x158] sm:$0xff] }
  0x58   : > { %1037 = vmatpush1.bf16.msra.mxu0 %v3272_v54  ;;  %v3309_v54 = vld [vmem:[%s4567_s1 + $0x188] ss:$16 sps:$4 sm:$0xff]  }
  0x59   : > { %1247 = vmatpush1.bf16.msra.mxu1 %v3269_v53  ;;  %1038 = vmatprep.subr.bf16.mxu0 %v3273_v55  ;;  %v3893_v53 = vpack.c.bf16 %v385_v47, %v382_v46  ;;  %v3314_v55 = vld [vmem:[%s4567_s1 + $0x1ac] ss:$16 sps:$4 sm:$0xff]   ;;  %v390_v46 = vld [vmem:[%s3693_s29 + $0x170] sm:$0xff]  ;;  %v3330_v47 = vld [vmem:[%s4567_s1 + $0x268] ss:$16 sps:$4 sm:$0xff]  }
  0x5a   : > { %1248 = vmatprep.subr.bf16.mxu1 %v3277_v58  ;;  %v362_v58 = vld [vmem:[%s3693_s29 + $0x90] sm:$0xff]  ;;  %v414_v51 = vpack.c.bf16 %v390_v46, %v387_v45 }
  0x5c   : > { %1180 = vmatmul.mubr.bf16.gmra.mrb[8].mxu1 %v3773_v62  ;;  %1039 = vmatpush1.bf16.msra.mxu0 %v3278_v1  ;;  %v3317_v1 = vld [vmem:[%s4567_s1 + $0x1cc] ss:$16 sps:$4 sm:$0xff]  }
  0x5d   : > { %1249 = vmatpush1.bf16.msra.mxu1 %v3275_v63  ;;  %1040 = vmatprep.subr.bf16.mxu0 %v3279_v2  ;;  %v391_v63 = vld [vmem:[%s3693_s29 + $0x178] sm:$0xff]  ;;  %v369_v2 = vld [vmem:[%s3693_s29 + $0xc8] sm:$0xff] }
  0x5e   : > { %1250 = vmatprep.subr.bf16.mxu1 %v3283_v3  ;;  %1189 = vmatprep.mubr.bf16.mxu1 %v3500_v0  ;;  %v372_v3 = vld [vmem:[%s3693_s29 + $0xe0] sm:$0xff] }
  0x5f   : > { %v3929_v8 = vpack.c.bf16 %v372_v3, %v369_v2  ;;  %v3344_v2 = vld [vmem:[%s4567_s1 + $0x2ec] ss:$16 sps:$4 sm:$0xff]   ;;  %v3363_v3 = vld [vmem:[%s4569_s3 + $0x60] ss:$8 sps:$4 sm:$0xff]  }
  0x60   : > { %1041 = vmatpush1.bf16.msra.mxu0 %v3284_v5  ;;  %v3922_v5 = vpack.c.bf16 %v365_v59, %v362_v58  ;;  %v3336_v58 = vld [vmem:[%s4567_s1 + $0x2a8] ss:$16 sps:$4 sm:$0xff]   ;;  %v3341_v59 = vld [vmem:[%s4567_s1 + $0x2cc] ss:$16 sps:$4 sm:$0xff]  }
  0x61   : > { %1251 = vmatpush1.bf16.msra.mxu1 %v3281_v4  ;;  %1042 = vmatprep.subr.bf16.mxu0 %v3285_v6  ;;  %v3315_v4 = vld [vmem:[%s4567_s1 + $0x1c8] ss:$16 sps:$4 sm:$0xff]   ;;  %v3924_v6 = vpack.c.bf16 %v391_v63, %v388_v60 }
  0x62   : > { %1252 = vmatprep.subr.bf16.mxu1 %v3289_v9  ;;  %v3318_v9 = vld [vmem:[%s4567_s1 + $0x1e8] ss:$16 sps:$4 sm:$0xff]  }
  0x63   : > { %v3339_v63 = vld [vmem:[%s4567_s1 + $0x2c8] ss:$16 sps:$4 sm:$0xff]  }
  0x64   : > { %1190 = vmatmul.mubr.bf16.gmra.mrb[12].mxu1 %v3804_v10  ;;  %1043 = vmatpush1.bf16.msra.mxu0 %v3290_v12  ;;  %v3347_v12 = vld [vmem:[%s4569_s3 + $0x4] ss:$8 sps:$4 sm:$0xff]  }
  0x65   : > { %1253 = vmatpush1.bf16.msra.mxu1 %v3287_v11  ;;  %1044 = vmatprep.subr.bf16.mxu0 %v3291_v13  ;;  %v3345_v11 = vld [vmem:[%s4569_s3] ss:$8 sps:$4 sm:$0xff]  }
  0x66   : > { %1254 = vmatprep.subr.bf16.mxu1 %v3295_v14  ;;  %1199 = vmatprep.mubr.bf16.mxu1 %v3500_v0  ;;  %v368_v13 = vld [vmem:[%s3693_s29 + $0xc0] sm:$0xff]  ;;  %v371_v14 = vld [vmem:[%s3693_s29 + $0xd8] sm:$0xff] }
  0x67   : > { %v3957_v20 = vpack.c.bf16 %v371_v14, %v368_v13  ;;  %v3377_v13 = vld [vmem:[%s4569_s3 + $0xa4] ss:$8 sps:$4 sm:$0xff]   ;;  %v3375_v14 = vld [vmem:[%s4569_s3 + $0xa0] ss:$8 sps:$4 sm:$0xff]  }
  0x68   : > { %1045 = vmatpush1.bf16.msra.mxu0 %v3296_v16  ;;  %v3323_v16 = vld [vmem:[%s4567_s1 + $0x20c] ss:$16 sps:$4 sm:$0xff]  }
  0x69   : > { %1255 = vmatpush1.bf16.msra.mxu1 %v3293_v15  ;;  %v3350_v15 = vld [vmem:[%s4569_s3 + $0x14] ss:$8 sps:$4 sm:$0xff]   ;;  %2022 = vmatprep.subr.bf16.mxu0 %v3347_v12  ;;  %v3372_v12 = vld [vmem:[%s4569_s3 + $0x90] ss:$8 sps:$4 sm:$0xff]  }
  0x6a   : > { %1256 = vmatprep.subr.bf16.mxu1 %v3299_v21  ;;  %v3962_v21 = vpack.c.bf16 %v378_v18, %v375_v17  ;;  %v3383_v17 = vld [vmem:[%s4569_s3 + $0xc4] ss:$8 sps:$4 sm:$0xff]   ;;  %v3381_v18 = vld [vmem:[%s4569_s3 + $0xc0] ss:$8 sps:$4 sm:$0xff]  }
  0x6b   : > { %1047 = vmatmul.mubr.bf16.vlgmr.msra.gmra.mrb[0].mxu0 %v3835_v24 }
  0x6c   : > { %1200 = vmatmul.mubr.bf16.gmra.mrb[16].mxu1 %v3837_v25  ;;  %1056 = vmatprep.mubr.bf16.mxu0 %v3842_v27 }
  0x6d   : > { %1257 = vmatpush1.bf16.msra.mxu1 %v3297_v26  ;;  %1209 = vmatprep.mubr.bf16.mxu1 %v3500_v0  ;;  %v374_v26 = vld [vmem:[%s3693_s29 + $0xf0] sm:$0xff] }
  0x6e   : > { %1258 = vmatprep.subr.bf16.mxu1 %v3302_v28  ;;  %2023 = vmatpush1.bf16.msra.mxu0 %v3345_v11  ;;  %v377_v28 = vld [vmem:[%s3693_s29 + $0x108] sm:$0xff]  ;;  %v3374_v11 = vld [vmem:[%s4569_s3 + $0x94] ss:$8 sps:$4 sm:$0xff]  }
  0x6f   : > { %2024 = vmatprep.subr.bf16.mxu0 %v3350_v15  ;;  %v3380_v15 = vld [vmem:[%s4569_s3 + $0xb4] ss:$8 sps:$4 sm:$0xff]  }
  0x71   : > { %1259 = vmatpush1.bf16.msra.mxu1 %v3300_v29  ;;  %v3324_v29 = vld [vmem:[%s4567_s1 + $0x228] ss:$16 sps:$4 sm:$0xff]  }
  0x72   : > { %1260 = vmatprep.subr.bf16.mxu1 %v3305_v34  ;;  %2025 = vmatpush1.bf16.msra.mxu0 %v3348_v22  ;;  %v3327_v34 = vld [vmem:[%s4567_s1 + $0x248] ss:$16 sps:$4 sm:$0xff]   ;;  %v3392_v22 = vld [vmem:[%s4569_s3 + $0xf4] ss:$8 sps:$4 sm:$0xff]  }
  0x73   : > { %1057 = vmatmul.mubr.bf16.gmra.mrb[4].mxu0 %v3863_v38  ;;  %2026 = vmatprep.subr.bf16.mxu0 %v3353_v23  ;;  %v3390_v23 = vld [vmem:[%s4569_s3 + $0xf0] ss:$8 sps:$4 sm:$0xff]  }
  0x74   : > { %1210 = vmatmul.mubr.bf16.gmra.mrb[20].mxu1 %v3865_v39  ;;  %1066 = vmatprep.mubr.bf16.mxu0 %v3870_v41 }
  0x75   : > { %1261 = vmatpush1.bf16.msra.mxu1 %v3303_v40  ;;  %1219 = vmatprep.mubr.bf16.mxu1 %v3500_v0  ;;  %v3354_v40 = vld [vmem:[%s4569_s3 + $0x30] ss:$8 sps:$4 sm:$0xff]  }
  0x76   : > { %1262 = vmatprep.subr.bf16.mxu1 %v3308_v42  ;;  %v3359_v42 = vld [vmem:[%s4569_s3 + $0x44] ss:$8 sps:$4 sm:$0xff]   ;;  %2027 = vmatpush1.bf16.msra.mxu0 %v3351_v33 }
  0x77   : > { %2028 = vmatprep.subr.bf16.mxu0 %v3356_v35 }
  0x79   : > { %1263 = vmatpush1.bf16.msra.mxu1 %v3306_v43  ;;  %v380_v43 = vld [vmem:[%s3693_s29 + $0x120] sm:$0xff] }
  0x7a   : > { %1264 = vmatprep.subr.bf16.mxu1 %v3311_v49  ;;  %v3335_v49 = vld [vmem:[%s4567_s1 + $0x28c] ss:$16 sps:$4 sm:$0xff]   ;;  %2029 = vmatpush1.bf16.msra.mxu0 %v3354_v40 }
  0x7b   : > { %1067 = vmatmul.mubr.bf16.gmra.mrb[8].mxu0 %v3891_v52  ;;  %2030 = vmatprep.subr.bf16.mxu0 %v3359_v42 }
  0x7c   : > { %1220 = vmatmul.mubr.bf16.gmra.mrb[24].mxu1 %v3893_v53  ;;  %1076 = vmatprep.mubr.bf16.mxu0 %v3901_v56 }
  0x7d   : > { %1265 = vmatpush1.bf16.msra.mxu1 %v3309_v54  ;;  %1229 = vmatprep.mubr.bf16.mxu1 %v3500_v0  ;;  %v3338_v54 = vld [vmem:[%s4567_s1 + $0x2ac] ss:$16 sps:$4 sm:$0xff]  }
  0x7e   : > { %1266 = vmatprep.subr.bf16.mxu1 %v3314_v55  ;;  %2031 = vmatpush1.bf16.msra.mxu0 %v3357_v50  ;;  %v386_v55 = vld [vmem:[%s3693_s29 + $0x150] sm:$0xff] }
  0x81   : > { %1267 = vmatpush1.bf16.msra.mxu1 %v3312_v57  ;;  %v389_v57 = vld [vmem:[%s3693_s29 + $0x168] sm:$0xff] }
  0x82   : > { %1268 = vmatprep.subr.bf16.mxu1 %v3317_v1  ;;  %v413_v60 = vpack.c.bf16 %v389_v57, %v386_v55  ;;  %v3365_v1 = vld [vmem:[%s4569_s3 + $0x64] ss:$8 sps:$4 sm:$0xff]  }
  0x83   : > { %1077 = vmatmul.mubr.bf16.gmra.mrb[12].mxu0 %v3922_v5 }
  0x84   : > { %1230 = vmatmul.mubr.bf16.gmra.mrb[28].mxu1 %v3924_v6  ;;  %1086 = vmatprep.mubr.bf16.mxu0 %v3929_v8 }
  0x85   : > { %1269 = vmatpush1.bf16.msra.mxu1 %v3315_v4  ;;  %1272 = vmatprep.mubr.bf16.mxu1 %v3771_v61  ;;  %v3326_v61 = vld [vmem:[%s4567_s1 + $0x22c] ss:$16 sps:$4 sm:$0xff]   ;;  %v3342_v4 = vld [vmem:[%s4567_s1 + $0x2e8] ss:$16 sps:$4 sm:$0xff]  }
  0x86   : > { %1270 = vmatprep.subr.bf16.mxu1 %v3320_v7  ;;  %v3368_v7 = vld [vmem:[%s4569_s3 + $0x74] ss:$8 sps:$4 sm:$0xff]  }
  0x89   : > { %1271 = vmatpush1.bf16.msra.mxu1 %v3318_v9  ;;  %v3366_v9 = vld [vmem:[%s4569_s3 + $0x70] ss:$8 sps:$4 sm:$0xff]  }
  0x8a   : > { %1353 = vmatprep.subr.bf16.mxu1 %v3323_v16  ;;  %v3378_v16 = vld [vmem:[%s4569_s3 + $0xb0] ss:$8 sps:$4 sm:$0xff]  }
  0x8b   : > { %1087 = vmatmul.mubr.bf16.gmra.mrb[16].mxu0 %v3957_v20 }
  0x8c   : > { %1273 = vmatmul.mubr.bf16.vlgmr.msra.gmra.mrb[32].mxu1 %v3835_v24  ;;  %1096 = vmatprep.mubr.bf16.mxu0 %v3962_v21  ;;  %v3987_v24 = vpack.c.bf16 %v377_v28, %v374_v26  ;;  %v3395_v26 = vld [vmem:[%s4569_s3 + $0x104] ss:$8 sps:$4 sm:$0xff]  }
  0x8d   : > { %1354 = vmatpush1.bf16.msra.mxu1 %v3321_v19  ;;  %1282 = vmatprep.mubr.bf16.mxu1 %v3842_v27  ;;  %v3332_v27 = vld [vmem:[%s4567_s1 + $0x26c] ss:$16 sps:$4 sm:$0xff]  }
  0x8e   : > { %1355 = vmatprep.subr.bf16.mxu1 %v3326_v61  ;;  %v3386_v19 = vld [vmem:[%s4569_s3 + $0xd4] ss:$8 sps:$4 sm:$0xff]   ;;  %v3389_v61 = vld [vmem:[%s4569_s3 + $0xe4] ss:$8 sps:$4 sm:$0xff]  }
  0x91   : > { %1356 = vmatpush1.bf16.msra.mxu1 %v3324_v29 }
  0x92   : > { %1357 = vmatprep.subr.bf16.mxu1 %v3329_v32 }
  0x93   : > { %1097 = vmatmul.mubr.bf16.gmra.mrb[20].mxu0 %v3987_v24 }
  0x94   : > { %1283 = vmatmul.mubr.bf16.gmra.mrb[36].mxu1 %v3863_v38  ;;  %1106 = vmatprep.mubr.bf16.mxu0 %v3995_v36  ;;  %v4023_v38 = vpack.c.bf16 %v383_v44, %v380_v43 }
  0x95   : > { %1292 = vmatprep.mubr.bf16.mxu1 %v3870_v41  ;;  %1358 = vmatpush1.bf16.msra.mxu1 %v3327_v34  ;;  %v3333_v41 = vld [vmem:[%s4567_s1 + $0x288] ss:$16 sps:$4 sm:$0xff]  }
  0x96   : > { %1359 = vmatprep.subr.bf16.mxu1 %v3332_v27 }
  0x99   : > { %1360 = vmatpush1.bf16.msra.mxu1 %v3330_v47 }
  0x9a   : > { %1361 = vmatprep.subr.bf16.mxu1 %v3335_v49 }
  0x9b   : > { %1107 = vmatmul.mubr.bf16.gmra.mrb[24].mxu0 %v4023_v38 }
  0x9c   : > { %1293 = vmatmul.mubr.bf16.gmra.mrb[40].mxu1 %v3891_v52  ;;  %1116 = vmatprep.mubr.bf16.mxu0 %v414_v51  ;;  %v3362_v52 = vld [vmem:[%s4569_s3 + $0x54] ss:$8 sps:$4 sm:$0xff]  }
  0x9d   : > { %1302 = vmatprep.mubr.bf16.mxu1 %v3901_v56  ;;  %1362 = vmatpush1.bf16.msra.mxu1 %v3333_v41  ;;  %v3360_v56 = vld [vmem:[%s4569_s3 + $0x50] ss:$8 sps:$4 sm:$0xff]  }
  0x9e   : > { %1363 = vmatprep.subr.bf16.mxu1 %v3338_v54  ;;  %2032 = vmatprep.subr.bf16.mxu0 %v3362_v52 }
  0x9f   : > { %2033 = vmatpush1.bf16.msra.mxu0 %v3360_v56 }
  0xa0   : > { %2034 = vmatprep.subr.bf16.mxu0 %v3365_v1 }
  0xa1   : > { %1364 = vmatpush1.bf16.msra.mxu1 %v3336_v58 }
  0xa2   : > { %1365 = vmatprep.subr.bf16.mxu1 %v3341_v59 }
  0xa3   : > { %1117 = vmatmul.mubr.bf16.gmra.mrb[28].mxu0 %v413_v60 }
  0xa4   : > { %1303 = vmatmul.mubr.bf16.gmra.mrb[44].mxu1 %v3922_v5  ;;  %2035 = vmatpush1.bf16.msra.mxu0 %v3363_v3  ;;  %v3371_v5 = vld [vmem:[%s4569_s3 + $0x84] ss:$8 sps:$4 sm:$0xff]  }
  0xa5   : > { %1312 = vmatprep.mubr.bf16.mxu1 %v3929_v8  ;;  %1366 = vmatpush1.bf16.msra.mxu1 %v3339_v63  ;;  %v3369_v8 = vld [vmem:[%s4569_s3 + $0x80] ss:$8 sps:$4 sm:$0xff]  }
  0xa6   : > { %1367 = vmatprep.subr.bf16.mxu1 %v3344_v2  ;;  %2036 = vmatprep.subr.bf16.mxu0 %v3368_v7 }
  0xa8   : > { %2037 = vmatpush1.bf16.msra.mxu0 %v3366_v9 }
  0xa9   : > { %1368 = vmatpush1.bf16.msra.mxu1 %v3342_v4  ;;  %2038 = vmatprep.subr.bf16.mxu0 %v3371_v5 }
  0xac   : > { %1313 = vmatmul.mubr.bf16.gmra.mrb[48].mxu1 %v3957_v20  ;;  %2039 = vmatpush1.bf16.msra.mxu0 %v3369_v8  ;;  %v3384_v20 = vld [vmem:[%s4569_s3 + $0xd0] ss:$8 sps:$4 sm:$0xff]  }
  0xad   : > { %1322 = vmatprep.mubr.bf16.mxu1 %v3962_v21  ;;  %2040 = vmatprep.subr.bf16.mxu0 %v3374_v11  ;;  %v3387_v21 = vld [vmem:[%s4569_s3 + $0xe0] ss:$8 sps:$4 sm:$0xff]  }
  0xb0   : > { %2041 = vmatpush1.bf16.msra.mxu0 %v3372_v12 }
  0xb1   : > { %2042 = vmatprep.subr.bf16.mxu0 %v3377_v13 }
  0xb4   : > { %1323 = vmatmul.mubr.bf16.gmra.mrb[52].mxu1 %v3987_v24  ;;  %2043 = vmatpush1.bf16.msra.mxu0 %v3375_v14 }
  0xb5   : > { %1332 = vmatprep.mubr.bf16.mxu1 %v3995_v36  ;;  %2044 = vmatprep.subr.bf16.mxu0 %v3380_v15  ;;  %v4163_v36 = vld [vmem:[%s4568_s2] sm:$0xf] }
  0xb8   : > { %2045 = vmatpush1.bf16.msra.mxu0 %v3378_v16 }
  0xb9   : > { %2046 = vmatprep.subr.bf16.mxu0 %v3383_v17 }
  0xbc   : > { %1333 = vmatmul.mubr.bf16.gmra.mrb[56].mxu1 %v4023_v38  ;;  %2047 = vmatpush1.bf16.msra.mxu0 %v3381_v18 }
  0xbd   : > { %1342 = vmatprep.mubr.bf16.mxu1 %v414_v51  ;;  %2048 = vmatprep.subr.bf16.mxu0 %v3386_v19 }
  0xc0   : > { %2049 = vmatpush1.bf16.msra.mxu0 %v3384_v20 }
  0xc1   : > { %2050 = vmatprep.subr.bf16.mxu0 %v3389_v61 }
  0xc4   : > { %1343 = vmatmul.mubr.bf16.gmra.mrb[60].mxu1 %v413_v60  ;;  %2051 = vmatpush1.bf16.msra.mxu0 %v3387_v21 }
  0xc5   : > { %1385 = vmatprep.mubr.bf16.mxu1 %v3500_v0  ;;  %2052 = vmatprep.subr.bf16.mxu0 %v3392_v22 }
  0xc8   : > { %2053 = vmatpush1.bf16.msra.mxu0 %v3390_v23 }
  0xc9   : > { %2135 = vmatprep.subr.bf16.mxu0 %v3395_v26  ;;  %v3393_v26 = vld [vmem:[%s4569_s3 + $0x100] ss:$8 sps:$4 sm:$0xff]  }
  0xcc   : > { %1386 = vmatmul.mubr.bf16.vlgmr.msra.gmra.mrb[32].mxu1 %v3709_v37 }
  0xcd   : > { %1395 = vmatprep.mubr.bf16.mxu1 %v3500_v0 }
  0xd4   : > { %1396 = vmatmul.mubr.bf16.gmra.mrb[36].mxu1 %v3739_v48 }
  0xd5   : > { %1405 = vmatprep.mubr.bf16.mxu1 %v3500_v0 }
  0xdc   : > { %1406 = vmatmul.mubr.bf16.gmra.mrb[40].mxu1 %v3773_v62 }
  0xdd   : > { %1415 = vmatprep.mubr.bf16.mxu1 %v3500_v0 }
  0xe4   : > { %1416 = vmatmul.mubr.bf16.gmra.mrb[44].mxu1 %v3804_v10 }
  0xe5   : > { %1425 = vmatprep.mubr.bf16.mxu1 %v3500_v0 }
  0xec   : > { %1426 = vmatmul.mubr.bf16.gmra.mrb[48].mxu1 %v3837_v25 }
  0xed   : > { %1435 = vmatprep.mubr.bf16.mxu1 %v3500_v0 }
  0xf4   : > { %1436 = vmatmul.mubr.bf16.gmra.mrb[52].mxu1 %v3865_v39  ;;  %v514_v39 = vlaneseq }
  0xf5   : > { %1445 = vmatprep.mubr.bf16.mxu1 %v3500_v0 }
  0xfc   : > { %1446 = vmatmul.mubr.bf16.gmra.mrb[56].mxu1 %v3893_v53 }
  0xfd   : > { %1455 = vmatprep.mubr.bf16.mxu1 %v3500_v0  ;;  %v4151_v0 = vshrl.u32 %v514_v39, 7 }
  0xff   : > { %v516_v34 = vsub.s32 0, %v4151_v0  ;;  %v520_v27 = vsub.s32 1, %v4151_v0 }
 0x101   : > { %v4171_v42 = vrot.slane %v4163_v36, %v516_v34  ;;  %v4176_v43 = vrot.slane %v4163_v36, %v520_v27 }
 0x104   : > { %1456 = vmatmul.mubr.bf16.gmra.mrb[60].mxu1 %v3924_v6 }
 0x11f   : > { %v1161_v37 = vpop.f32.mrb[0].mxu1 }
 0x120   : > { %v1163_v48 = vpop.f32.mrb[1].mxu1 }
 0x121   : > { %v1165_v62 = vpop.f32.mrb[2].mxu1 }
 0x122   : > { %v1167_v10 = vpop.f32.mrb[3].mxu1 }
 0x127   : > { %v1171_v28 = vpop.f32.mrb[4].mxu1 }
 0x128   : > { %v1173_v29 = vpop.f32.mrb[5].mxu1 }
 0x129   : > { %v1175_v25 = vpop.f32.mrb[6].mxu1 }
 0x12a   : > { %v1177_v30 = vpop.f32.mrb[7].mxu1 }
 0x12f   : > { %v4143_v31 = vpop.f32.mrb[8].mxu1 }
 0x130   : > { %v4145_v32 = vpop.f32.mrb[9].mxu1 }
 0x131   : > { %v4147_v33 = vpop.f32.mrb[10].mxu1 }
 0x132   : > { %v4149_v53 = vpop.f32.mrb[11].mxu1 }
 0x137   : > { %v4153_v6 = vpop.f32.mrb[12].mxu1 }
 0x138   : > { %v4155_v24 = vpop.f32.mrb[13].mxu1 }
 0x139   : > { %v4158_v35 = vpop.f32.mrb[14].mxu1 }
 0x13a   : > { %v4166_v40 = vpop.f32.mrb[15].mxu1 }
 0x13e   : > { %v1048_v44 = vpop.f32.mrb[0].mxu0 }
 0x13f   : > { %v4178_v45 = vpop.f32.mrb[16].mxu1  ;;  %v1049_v46 = vadd.f32 %v1048_v44, %v4171_v42  ;;  %v1050_v47 = vpop.f32.mrb[1].mxu0 }
 0x140   : > { %v4181_v49 = vpop.f32.mrb[17].mxu1  ;;  %v1051_v50 = vadd.f32 %v1050_v47, %v4176_v43  ;;  %v1052_v38 = vpop.f32.mrb[2].mxu0  ;;  %v3396_v47 = vld [vmem:[%s4569_s3 + $0x110] ss:$8 sps:$4 sm:$0xff]  }
 0x141   : > { %v4184_v41 = vpop.f32.mrb[18].mxu1  ;;  %v1162_v51 = vadd.f32 %v1161_v37, %v1049_v46  ;;  %v1053_v54 = vadd.f32 %v1052_v38, %v4171_v42  ;;  %v1054_v55 = vpop.f32.mrb[3].mxu0 }
 0x142   : > { %v4187_v57 = vpop.f32.mrb[19].mxu1  ;;  %v1164_v58 = vadd.f32 %v1163_v48, %v1051_v50  ;;  %v1055_v59 = vadd.f32 %v1054_v55, %v4176_v43 }
 0x143   : > { %v1466_v60 = vmul.f32 0.2, %v1162_v51  ;;  %v1166_v52 = vadd.f32 %v1165_v62, %v1053_v54  ;;  %v3398_v62 = vld [vmem:[%s4569_s3 + $0x114] ss:$8 sps:$4 sm:$0xff]  }
 0x144   : > { %v1467_v56 = vmul.f32 0.2, %v1164_v58  ;;  %v1168_v63 = vadd.f32 %v1167_v10, %v1055_v59 }
 0x145   : > { %v1470_v1 = vmul.f32 0.2, %v1166_v52  ;;  %v1530_v7 = vmax.f32 %v1162_v51, %v1466_v60 }
 0x146   : > { %v1471_v2 = vmul.f32 0.2, %v1168_v63  ;;  %v1058_v3 = vpop.f32.mrb[4].mxu0  ;;  %v1531_v12 = vmax.f32 %v1164_v58, %v1467_v56 }
 0x147   : > { %v4190_v4 = vpop.f32.mrb[20].mxu1  ;;  %v1534_v9 = vmax.f32 %v1166_v52, %v1470_v1  ;;  %v1059_v5 = vadd.f32 %v1058_v3, %v4171_v42  ;;  %v1060_v8 = vpop.f32.mrb[5].mxu0 }
 0x148   : > { %v4193_v11 = vpop.f32.mrb[21].mxu1  ;;  %v1535_v13 = vmax.f32 %v1168_v63, %v1471_v2  ;;  %v1061_v14 = vadd.f32 %v1060_v8, %v4176_v43  ;;  %v1062_v15 = vpop.f32.mrb[6].mxu0  ;;  %v3399_v8 = vld [vmem:[%s4569_s3 + $0x120] ss:$8 sps:$4 sm:$0xff]  }
 0x149   : > { %v4196_v16 = vpop.f32.mrb[22].mxu1  ;;  %v1594_v17 = vpack.c.bf16 %v1534_v9, %v1530_v7  ;;  %v1172_v18 = vadd.f32 %v1171_v28, %v1059_v5  ;;  %v1063_v19 = vadd.f32 %v1062_v15, %v4171_v42  ;;  %v1064_v20 = vpop.f32.mrb[7].mxu0 }
 0x14a   : > { %v4199_v61 = vpop.f32.mrb[23].mxu1  ;;  %v1174_v21 = vadd.f32 %v1173_v29, %v1061_v14  ;;  %v1065_v22 = vadd.f32 %v1064_v20, %v4176_v43  ;;  %v1595_v23 = vpack.c.bf16 %v1535_v13, %v1531_v12 }
 0x14b   : > { %v1474_v37 = vmul.f32 0.2, %v1172_v18  ;;  %v1176_v48 = vadd.f32 %v1175_v25, %v1063_v19 }
 0x14c   : > { %v1475_v10 = vmul.f32 0.2, %v1174_v21  ;;  %v1178_v28 = vadd.f32 %v1177_v30, %v1065_v22  ;;  %2054 = vmatprep.mubr.bf16.mxu0 %v1595_v23  ;;  %v3401_v30 = vld [vmem:[%s4569_s3 + $0x124] ss:$8 sps:$4 sm:$0xff]  }
 0x14d   : > { %v1478_v39 = vmul.f32 0.2, %v1176_v48  ;;  %2055 = vmatmul.mubr.bf16.vlgmr.msra.gmra.mrb[32].mxu0 %v1594_v17  ;;  %v1538_v50 = vmax.f32 %v1172_v18, %v1474_v37 }
 0x14e   : > { %v1479_v44 = vmul.f32 0.2, %v1178_v28  ;;  %v1068_v29 = vpop.f32.mrb[8].mxu0  ;;  %2136 = vmatpush1.bf16.msra.mxu0 %v3393_v26  ;;  %v1539_v55 = vmax.f32 %v1174_v21, %v1475_v10 }
 0x14f   : > { %v4208_v46 = vpop.f32.mrb[24].mxu1  ;;  %v1542_v25 = vmax.f32 %v1176_v48, %v1478_v39  ;;  %v1069_v38 = vadd.f32 %v1068_v29, %v4171_v42  ;;  %v1070_v51 = vpop.f32.mrb[9].mxu0  ;;  %2137 = vmatprep.subr.bf16.mxu0 %v3398_v62 }
 0x150   : > { %v4214_v54 = vpop.f32.mrb[25].mxu1  ;;  %v1543_v58 = vmax.f32 %v1178_v28, %v1479_v44  ;;  %v1071_v59 = vadd.f32 %v1070_v51, %v4176_v43  ;;  %v1072_v60 = vpop.f32.mrb[10].mxu0 }
 0x151   : > { %v4220_v52 = vpop.f32.mrb[26].mxu1  ;;  %v1182_v56 = vadd.f32 %v4143_v31, %v1069_v38  ;;  %v1073_v63 = vadd.f32 %v1072_v60, %v4171_v42  ;;  %v1074_v1 = vpop.f32.mrb[11].mxu0  ;;  %v1598_v3 = vpack.c.bf16 %v1542_v25, %v1538_v50  ;;  %v3404_v31 = vld [vmem:[%s4569_s3 + $0x134] ss:$8 sps:$4 sm:$0xff]  }
 0x152   : > { %v4224_v2 = vpop.f32.mrb[27].mxu1  ;;  %v1184_v7 = vadd.f32 %v4145_v32, %v1071_v59  ;;  %v1075_v9 = vadd.f32 %v1074_v1, %v4176_v43  ;;  %v1599_v5 = vpack.c.bf16 %v1543_v58, %v1539_v55  ;;  %2138 = vmatpush1.bf16.msra.mxu0 %v3396_v47  ;;  %v3408_v1 = vld [vmem:[%s4569_s3 + $0x150] ss:$8 sps:$4 sm:$0xff]  }
 0x153   : > { %v1482_v12 = vmul.f32 0.2, %v1182_v56  ;;  %v1186_v13 = vadd.f32 %v4147_v33, %v1073_v63  ;;  %2139 = vmatprep.subr.bf16.mxu0 %v3401_v30  ;;  %v3402_v33 = vld [vmem:[%s4569_s3 + $0x130] ss:$8 sps:$4 sm:$0xff]   ;;  %v3405_v30 = vld [vmem:[%s4569_s3 + $0x140] ss:$8 sps:$4 sm:$0xff]  }
 0x154   : > { %v1483_v14 = vmul.f32 0.2, %v1184_v7  ;;  %v1188_v15 = vadd.f32 %v4149_v53, %v1075_v9  ;;  %2064 = vmatprep.mubr.bf16.mxu0 %v1599_v5  ;;  %v3407_v53 = vld [vmem:[%s4569_s3 + $0x144] ss:$8 sps:$4 sm:$0xff]  }
 0x155   : > { %v1486_v32 = vmul.f32 0.2, %v1186_v13  ;;  %2065 = vmatmul.mubr.bf16.gmra.mrb[36].mxu0 %v1598_v3  ;;  %v1546_v20 = vmax.f32 %v1182_v56, %v1482_v12 }
 0x156   : > { %v1487_v17 = vmul.f32 0.2, %v1188_v15  ;;  %v1078_v18 = vpop.f32.mrb[12].mxu0  ;;  %2140 = vmatpush1.bf16.msra.mxu0 %v3399_v8  ;;  %v1547_v37 = vmax.f32 %v1184_v7, %v1483_v14 }
 0x157   : > { %v4236_v19 = vpop.f32.mrb[28].mxu1  ;;  %v1550_v21 = vmax.f32 %v1186_v13, %v1486_v32  ;;  %v1079_v22 = vadd.f32 %v1078_v18, %v4171_v42  ;;  %v1080_v23 = vpop.f32.mrb[13].mxu0  ;;  %2141 = vmatprep.subr.bf16.mxu0 %v3404_v31 }
 0x158   : > { %v4242_v26 = vpop.f32.mrb[29].mxu1  ;;  %v1551_v48 = vmax.f32 %v1188_v15, %v1487_v17  ;;  %v1081_v62 = vadd.f32 %v1080_v23, %v4176_v43  ;;  %v1082_v10 = vpop.f32.mrb[14].mxu0  ;;  %v4283_v23 = vld [vmem:[#allocation2 + $0x40] sm:$0xff]  }
 0x159   : > { %v4248_v28 = vpop.f32.mrb[30].mxu1  ;;  %v1192_v39 = vadd.f32 %v4153_v6, %v1079_v22  ;;  %v1083_v44 = vadd.f32 %v1082_v10, %v4171_v42  ;;  %v1084_v29 = vpop.f32.mrb[15].mxu0  ;;  %v1602_v50 = vpack.c.bf16 %v1550_v21, %v1546_v20  ;;  %v3410_v6 = vld [vmem:[%s4569_s3 + $0x154] ss:$8 sps:$4 sm:$0xff]   ;;  %v3411_v20 = vld [vmem:[%s4569_s3 + $0x160] ss:$8 sps:$4 sm:$0xff]   ;;  %2970 = vmatprep.subr.bf16.mxu1 %v4283_v23 }
 0x15a   : > { %v4252_v47 = vpop.f32.mrb[31].mxu1  ;;  %v1194_v25 = vadd.f32 %v4155_v24, %v1081_v62  ;;  %v1085_v38 = vadd.f32 %v1084_v29, %v4176_v43  ;;  %v1603_v51 = vpack.c.bf16 %v1551_v48, %v1547_v37  ;;  %2142 = vmatpush1.bf16.msra.mxu0 %v3402_v33  ;;  %v4286_v37 = vld [vmem:[#allocation2] sm:$0xff]   ;;  %v4289_v62 = vld [vmem:[#allocation2 + $0x48] sm:$0xff]  }
 0x15b   : > { %v1490_v55 = vmul.f32 0.2, %v1192_v39  ;;  %v1196_v58 = vadd.f32 %v4158_v35, %v1083_v44  ;;  %2143 = vmatprep.subr.bf16.mxu0 %v3407_v53  ;;  %2978 = vmatpush3.bf16.msra.mxu1 %v4286_v37 }
 0x15c   : > { %v1491_v59 = vmul.f32 0.2, %v1194_v25  ;;  %v1198_v60 = vadd.f32 %v4166_v40, %v1085_v38  ;;  %2074 = vmatprep.mubr.bf16.mxu0 %v1603_v51  ;;  %v3413_v40 = vld [vmem:[%s4569_s3 + $0x164] ss:$8 sps:$4 sm:$0xff]   ;;  %2971 = vmatprep.subr.bf16.mxu1 %v4289_v62 }
 0x15d   : > { %v1494_v24 = vmul.f32 0.2, %v1196_v58  ;;  %2075 = vmatmul.mubr.bf16.gmra.mrb[40].mxu0 %v1602_v50  ;;  %v1554_v3 = vmax.f32 %v1192_v39, %v1490_v55  ;;  %v3414_v39 = vld [vmem:[%s4569_s3 + $0x170] ss:$8 sps:$4 sm:$0xff]  }
 0x15e   : > { %v1495_v56 = vmul.f32 0.2, %v1198_v60  ;;  %v1088_v63 = vpop.f32.mrb[16].mxu0  ;;  %2144 = vmatpush1.bf16.msra.mxu0 %v3405_v30  ;;  %v1555_v5 = vmax.f32 %v1194_v25, %v1491_v59  ;;  %v3419_v25 = vld [vmem:[%s4569_s3 + $0x184] ss:$8 sps:$4 sm:$0xff]  }
 0x15f   : > { %v1558_v35 = vmax.f32 %v1196_v58, %v1494_v24  ;;  %v1089_v7 = vadd.f32 %v1088_v63, %v4171_v42  ;;  %v1090_v9 = vpop.f32.mrb[17].mxu0  ;;  %2145 = vmatprep.subr.bf16.mxu0 %v3410_v6  ;;  %v4301_v58 = vld [vmem:[#allocation2 + $0x8] sm:$0xff]  }
 0x160   : > { %v1559_v8 = vmax.f32 %v1198_v60, %v1495_v56  ;;  %v1091_v12 = vadd.f32 %v1090_v9, %v4176_v43  ;;  %v1092_v13 = vpop.f32.mrb[18].mxu0  ;;  %v4305_v56 = vld [vmem:[#allocation2 + $0x50] sm:$0xff]   ;;  %2979 = vmatpush3.bf16.msra.mxu1 %v4301_v58 }
 0x161   : > { %v1202_v31 = vadd.f32 %v4178_v45, %v1089_v7  ;;  %v1093_v14 = vadd.f32 %v1092_v13, %v4171_v42  ;;  %v1094_v15 = vpop.f32.mrb[19].mxu0  ;;  %v1606_v32 = vpack.c.bf16 %v1558_v35, %v1554_v3  ;;  %v3416_v45 = vld [vmem:[%s4569_s3 + $0x174] ss:$8 sps:$4 sm:$0xff]   ;;  %v3417_v35 = vld [vmem:[%s4569_s3 + $0x180] ss:$8 sps:$4 sm:$0xff]   ;;  %2972 = vmatprep.subr.bf16.mxu1 %v4305_v56 }
 0x162   : > { %v1204_v17 = vadd.f32 %v4181_v49, %v1091_v12  ;;  %v1095_v18 = vadd.f32 %v1094_v15, %v4176_v43  ;;  %v1607_v33 = vpack.c.bf16 %v1559_v8, %v1555_v5  ;;  %2146 = vmatpush1.bf16.msra.mxu0 %v3408_v1  ;;  %v3422_v9 = vld [vmem:[%s4569_s3 + $0x194] ss:$8 sps:$4 sm:$0xff]  }
 0x163   : > { %v1498_v21 = vmul.f32 0.2, %v1202_v31  ;;  %v1206_v22 = vadd.f32 %v4184_v41, %v1093_v14  ;;  %2147 = vmatprep.subr.bf16.mxu0 %v3413_v40  ;;  %v4319_v5 = vld [vmem:[#allocation2 + $0x10] sm:$0xff]   ;;  %v4321_v12 = vld [vmem:[#allocation2 + $0x58] sm:$0xff]  }
 0x164   : > { %v1499_v53 = vmul.f32 0.2, %v1204_v17  ;;  %v1208_v49 = vadd.f32 %v4187_v57, %v1095_v18  ;;  %2084 = vmatprep.mubr.bf16.mxu0 %v1607_v33  ;;  %2980 = vmatpush3.bf16.msra.mxu1 %v4319_v5 }
 0x165   : > { %v1502_v48 = vmul.f32 0.2, %v1206_v22  ;;  %2085 = vmatmul.mubr.bf16.gmra.mrb[44].mxu0 %v1606_v32  ;;  %v1562_v44 = vmax.f32 %v1202_v31, %v1498_v21  ;;  %2973 = vmatprep.subr.bf16.mxu1 %v4321_v12 }
 0x166   : > { %v1503_v41 = vmul.f32 0.2, %v1208_v49  ;;  %v1098_v10 = vpop.f32.mrb[20].mxu0  ;;  %2148 = vmatpush1.bf16.msra.mxu0 %v3411_v20  ;;  %v1563_v38 = vmax.f32 %v1204_v17, %v1499_v53  ;;  %v3425_v17 = vld [vmem:[%s4569_s3 + $0x1a4] ss:$8 sps:$4 sm:$0xff]  }
 0x167   : > { %v1566_v57 = vmax.f32 %v1206_v22, %v1502_v48  ;;  %v1099_v29 = vadd.f32 %v1098_v10, %v4171_v42  ;;  %v1100_v50 = vpop.f32.mrb[21].mxu0  ;;  %2149 = vmatprep.subr.bf16.mxu0 %v3416_v45  ;;  %v4333_v22 = vld [vmem:[#allocation2 + $0x18] sm:$0xff]  }
 0x168   : > { %v1567_v51 = vmax.f32 %v1208_v49, %v1503_v41  ;;  %v1101_v30 = vadd.f32 %v1100_v50, %v4176_v43  ;;  %v1102_v55 = vpop.f32.mrb[22].mxu0  ;;  %v4337_v41 = vld [vmem:[#allocation2 + $0x60] sm:$0xff]   ;;  %2981 = vmatpush3.bf16.msra.mxu1 %v4333_v22  ;;  %v3428_v50 = vld [vmem:[%s4569_s3 + $0x1b4] ss:$8 sps:$4 sm:$0xff]  }
 0x169   : > { %v1212_v6 = vadd.f32 %v4190_v4, %v1099_v29  ;;  %v1103_v59 = vadd.f32 %v1102_v55, %v4171_v42  ;;  %v1104_v60 = vpop.f32.mrb[23].mxu0  ;;  %v1610_v24 = vpack.c.bf16 %v1566_v57, %v1562_v44  ;;  %v3423_v57 = vld [vmem:[%s4569_s3 + $0x1a0] ss:$8 sps:$4 sm:$0xff]   ;;  %2974 = vmatprep.subr.bf16.mxu1 %v4337_v41 }
 0x16a   : > { %v1214_v63 = vadd.f32 %v4193_v11, %v1101_v30  ;;  %v1105_v1 = vadd.f32 %v1104_v60, %v4176_v43  ;;  %v1611_v3 = vpack.c.bf16 %v1567_v51, %v1563_v38  ;;  %2150 = vmatpush1.bf16.msra.mxu0 %v3414_v39  ;;  %v4351_v38 = vld [vmem:[#allocation2 + $0x20] sm:$0xff]  }
 0x16b   : > { %v1506_v7 = vmul.f32 0.2, %v1212_v6  ;;  %v1216_v4 = vadd.f32 %v4196_v16, %v1103_v59  ;;  %2151 = vmatprep.subr.bf16.mxu0 %v3419_v25  ;;  %v3420_v16 = vld [vmem:[%s4569_s3 + $0x190] ss:$8 sps:$4 sm:$0xff]  }
 0x16c   : > { %v1507_v11 = vmul.f32 0.2, %v1214_v63  ;;  %v1218_v40 = vadd.f32 %v4199_v61, %v1105_v1  ;;  %2094 = vmatprep.mubr.bf16.mxu0 %v1611_v3  ;;  %2982 = vmatpush3.bf16.msra.mxu1 %v4351_v38 }
 0x16d   : > { %v1510_v8 = vmul.f32 0.2, %v1216_v4  ;;  %2095 = vmatmul.mubr.bf16.gmra.mrb[48].mxu0 %v1610_v24  ;;  %v1570_v14 = vmax.f32 %v1212_v6, %v1506_v7 }
 0x16e   : > { %v1511_v13 = vmul.f32 0.2, %v1218_v40  ;;  %v1108_v31 = vpop.f32.mrb[24].mxu0  ;;  %2152 = vmatpush1.bf16.msra.mxu0 %v3417_v35  ;;  %v1571_v18 = vmax.f32 %v1214_v63, %v1507_v11 }
 0x16f   : > { %v1574_v15 = vmax.f32 %v1216_v4, %v1510_v8  ;;  %v1109_v61 = vadd.f32 %v1108_v31, %v4171_v42  ;;  %v1110_v32 = vpop.f32.mrb[25].mxu0  ;;  %2153 = vmatprep.subr.bf16.mxu0 %v3422_v9  ;;  %v3429_v31 = vld [vmem:[%s4569_s3 + $0x1c0] ss:$8 sps:$4 sm:$0xff]  }
 0x170   : > { %v1575_v33 = vmax.f32 %v1218_v40, %v1511_v13  ;;  %v1111_v20 = vadd.f32 %v1110_v32, %v4176_v43  ;;  %v1112_v21 = vpop.f32.mrb[26].mxu0 }
 0x171   : > { %v1222_v45 = vadd.f32 %v4208_v46, %v1109_v61  ;;  %v1113_v53 = vadd.f32 %v1112_v21, %v4171_v42  ;;  %v1114_v49 = vpop.f32.mrb[27].mxu0  ;;  %v1614_v48 = vpack.c.bf16 %v1574_v15, %v1570_v14  ;;  %v3432_v61 = vld [vmem:[%s4569_s3 + $0x1d0] ss:$8 sps:$4 sm:$0xff]   ;;  %v3435_v21 = vld [vmem:[%s4569_s3 + $0x1e0] ss:$8 sps:$4 sm:$0xff]  }
 0x172   : > { %v1224_v10 = vadd.f32 %v4214_v54, %v1111_v20  ;;  %v1115_v39 = vadd.f32 %v1114_v49, %v4176_v43  ;;  %v1615_v44 = vpack.c.bf16 %v1575_v33, %v1571_v18  ;;  %2154 = vmatpush1.bf16.msra.mxu0 %v3420_v16  ;;  %v524_v49 = vsub.s32 2, %v4151_v0 }
 0x173   : > { %v1514_v29 = vmul.f32 0.2, %v1222_v45  ;;  %v1226_v46 = vadd.f32 %v4220_v52, %v1113_v53  ;;  %2155 = vmatprep.subr.bf16.mxu0 %v3425_v17  ;;  %v3426_v52 = vld [vmem:[%s4569_s3 + $0x1b0] ss:$8 sps:$4 sm:$0xff]  }
 0x174   : > { %v1515_v54 = vmul.f32 0.2, %v1224_v10  ;;  %v1228_v25 = vadd.f32 %v4224_v2, %v1115_v39  ;;  %2104 = vmatprep.mubr.bf16.mxu0 %v1615_v44  ;;  %v3431_v2 = vld [vmem:[%s4569_s3 + $0x1c4] ss:$8 sps:$4 sm:$0xff]   ;;  %v3438_v53 = vld [vmem:[%s4569_s3 + $0x1f0] ss:$8 sps:$4 sm:$0xff]  }
 0x175   : > { %v1518_v51 = vmul.f32 0.2, %v1226_v46  ;;  %2105 = vmatmul.mubr.bf16.gmra.mrb[52].mxu0 %v1614_v48  ;;  %v1578_v6 = vmax.f32 %v1222_v45, %v1514_v29  ;;  %v3440_v45 = vld [vmem:[%s4569_s3 + $0x1f4] ss:$8 sps:$4 sm:$0xff]   ;;  %v528_v48 = vsub.s32 3, %v4151_v0 }
 0x176   : > { %v1519_v30 = vmul.f32 0.2, %v1228_v25  ;;  %v1118_v55 = vpop.f32.mrb[28].mxu0  ;;  %2156 = vmatpush1.bf16.msra.mxu0 %v3423_v57  ;;  %v1579_v63 = vmax.f32 %v1224_v10, %v1515_v54  ;;  %v4393_v10 = vrot.slane %v4163_v36, %v524_v49 }
 0x177   : > { %v1582_v59 = vmax.f32 %v1226_v46, %v1518_v51  ;;  %v1119_v60 = vadd.f32 %v1118_v55, %v4171_v42  ;;  %v1120_v24 = vpop.f32.mrb[29].mxu0  ;;  %2157 = vmatprep.subr.bf16.mxu0 %v3428_v50  ;;  %v4396_v39 = vrot.slane %v4163_v36, %v528_v48 }
 0x178   : > { %v1583_v1 = vmax.f32 %v1228_v25, %v1519_v30  ;;  %v1121_v3 = vadd.f32 %v1120_v24, %v4176_v43  ;;  %v1122_v35 = vpop.f32.mrb[30].mxu0 }
 0x179   : > { %v1232_v7 = vadd.f32 %v4236_v19, %v1119_v60  ;;  %v1123_v4 = vadd.f32 %v1122_v35, %v4171_v42  ;;  %v1124_v9 = vpop.f32.mrb[31].mxu0  ;;  %v1618_v11 = vpack.c.bf16 %v1582_v59, %v1578_v6  ;;  %v3434_v42 = vld [vmem:[%s4569_s3 + $0x1d4] ss:$8 sps:$4 sm:$0xff]  }
 0x17a   : > { %v1234_v40 = vadd.f32 %v4242_v26, %v1121_v3  ;;  %v1125_v8 = vadd.f32 %v1124_v9, %v4176_v43  ;;  %v1619_v13 = vpack.c.bf16 %v1583_v1, %v1579_v63  ;;  %2158 = vmatpush1.bf16.msra.mxu0 %v3426_v52 }
 0x17b   : > { %v1522_v16 = vmul.f32 0.2, %v1232_v7  ;;  %v1236_v14 = vadd.f32 %v4248_v28, %v1123_v4  ;;  %2159 = vmatprep.subr.bf16.mxu0 %v3431_v2  ;;  %v3437_v28 = vld [vmem:[%s4569_s3 + $0x1e4] ss:$8 sps:$4 sm:$0xff]  }
 0x17c   : > { %v1523_v19 = vmul.f32 0.2, %v1234_v40  ;;  %v1238_v15 = vadd.f32 %v4252_v47, %v1125_v8  ;;  %2114 = vmatprep.mubr.bf16.mxu0 %v1619_v13 }
 0x17d   : > { %v1526_v26 = vmul.f32 0.2, %v1236_v14  ;;  %2115 = vmatmul.mubr.bf16.gmra.mrb[56].mxu0 %v1618_v11  ;;  %v1586_v32 = vmax.f32 %v1232_v7, %v1522_v16 }
 0x17e   : > { %v1527_v43 = vmul.f32 0.2, %v1238_v15  ;;  %2160 = vmatpush1.bf16.msra.mxu0 %v3429_v31  ;;  %v1587_v18 = vmax.f32 %v1234_v40, %v1523_v19 }
 0x17f   : > { %v1590_v17 = vmax.f32 %v1236_v14, %v1526_v26  ;;  %2161 = vmatprep.subr.bf16.mxu0 %v3434_v42 }
 0x180   : > { %v1591_v33 = vmax.f32 %v1238_v15, %v1527_v43 }
 0x181   : > { %v1622_v20 = vpack.c.bf16 %v1590_v17, %v1586_v32 }
 0x182   : > { %v1623_v47 = vpack.c.bf16 %v1591_v33, %v1587_v18  ;;  %2162 = vmatpush1.bf16.msra.mxu0 %v3432_v61 }
 0x183   : > { %2163 = vmatprep.subr.bf16.mxu0 %v3437_v28 }
 0x184   : > { %2124 = vmatprep.mubr.bf16.mxu0 %v1623_v47 }
 0x185   : > { %2125 = vmatmul.mubr.bf16.gmra.mrb[60].mxu0 %v1622_v20 }
 0x186   : > { %2164 = vmatpush1.bf16.msra.mxu0 %v3435_v21 }
 0x187   : > { %2165 = vmatprep.subr.bf16.mxu0 %v3440_v45 }
 0x18a   : > { %2166 = vmatpush1.bf16.msra.mxu0 %v3438_v53 }
 0x18b   : > { %2906 = vmatprep.subr.bf16.mxu0 %v4283_v23 }
 0x19f   : > { %v1387_v44 = vpop.f32.mrb[32].mxu1 }
 0x1a0   : > { %v3050_v57 = vadd.f32 %v1387_v44, %v4393_v10  ;;  %v1389_v29 = vpop.f32.mrb[33].mxu1 }
 0x1a1   : > { %v3051_v46 = vadd.f32 %v1389_v29, %v4396_v39  ;;  %v1391_v50 = vpop.f32.mrb[34].mxu1 }
 0x1a2   : > { %v1468_v54 = vmul.f32 0.2, %v3050_v57  ;;  %v3052_v23 = vadd.f32 %v1391_v50, %v4393_v10  ;;  %v1393_v25 = vpop.f32.mrb[35].mxu1 }
 0x1a3   : > { %v1469_v51 = vmul.f32 0.2, %v3051_v46  ;;  %v3053_v30 = vadd.f32 %v1393_v25, %v4396_v39 }
 0x1a4   : > { %v1472_v55 = vmul.f32 0.2, %v3052_v23  ;;  %v1532_v6 = vmax.f32 %v3050_v57, %v1468_v54 }
 0x1a5   : > { %v1473_v52 = vmul.f32 0.2, %v3053_v30  ;;  %v1533_v36 = vmax.f32 %v3051_v46, %v1469_v51 }
 0x1a6   : > { %v1536_v59 = vmax.f32 %v3052_v23, %v1472_v55 }
 0x1a7   : > { %v1537_v60 = vmax.f32 %v3053_v30, %v1473_v52  ;;  %v1397_v24 = vpop.f32.mrb[36].mxu1 }
 0x1a8   : > { %v1596_v2 = vpack.c.bf16 %v1536_v59, %v1532_v6  ;;  %v3054_v63 = vadd.f32 %v1397_v24, %v4393_v10  ;;  %v1399_v1 = vpop.f32.mrb[37].mxu1 }
 0x1a9   : > { %v3055_v3 = vadd.f32 %v1399_v1, %v4396_v39  ;;  %v1401_v35 = vpop.f32.mrb[38].mxu1  ;;  %v1597_v7 = vpack.c.bf16 %v1537_v60, %v1533_v36 }
 0x1aa   : > { %v1476_v4 = vmul.f32 0.2, %v3054_v63  ;;  %v3056_v9 = vadd.f32 %v1401_v35, %v4393_v10  ;;  %v1403_v11 = vpop.f32.mrb[39].mxu1 }
 0x1ab   : > { %v1477_v40 = vmul.f32 0.2, %v3055_v3  ;;  %v3057_v8 = vadd.f32 %v1403_v11, %v4396_v39  ;;  %2167 = vmatprep.mubr.bf16.mxu0 %v1597_v7 }
 0x1ac   : > { %v1480_v13 = vmul.f32 0.2, %v3056_v9  ;;  %2168 = vmatmul.mubr.bf16.vlgmr.msra.gmra.mrb[32].mxu0 %v1596_v2  ;;  %v1540_v16 = vmax.f32 %v3054_v63, %v1476_v4 }
 0x1ad   : > { %v1481_v31 = vmul.f32 0.2, %v3057_v8  ;;  %2907 = vmatpush3.bf16.msra.mxu0 %v4286_v37  ;;  %v1541_v42 = vmax.f32 %v3055_v3, %v1477_v40 }
 0x1ae   : > { %v1544_v14 = vmax.f32 %v3056_v9, %v1480_v13  ;;  %2908 = vmatprep.subr.bf16.mxu0 %v4289_v62 }
 0x1af   : > { %v1545_v19 = vmax.f32 %v3057_v8, %v1481_v31  ;;  %v1407_v15 = vpop.f32.mrb[40].mxu1 }
 0x1b0   : > { %v3058_v26 = vadd.f32 %v1407_v15, %v4393_v10  ;;  %v1409_v43 = vpop.f32.mrb[41].mxu1  ;;  %v1600_v61 = vpack.c.bf16 %v1544_v14, %v1540_v16 }
 0x1b1   : > { %v3059_v32 = vadd.f32 %v1409_v43, %v4396_v39  ;;  %v1411_v17 = vpop.f32.mrb[42].mxu1  ;;  %v1601_v28 = vpack.c.bf16 %v1545_v19, %v1541_v42  ;;  %2909 = vmatpush3.bf16.msra.mxu0 %v4301_v58 }
 0x1b2   : > { %v1484_v18 = vmul.f32 0.2, %v3058_v26  ;;  %v3060_v37 = vadd.f32 %v1411_v17, %v4393_v10  ;;  %v1413_v33 = vpop.f32.mrb[43].mxu1  ;;  %2910 = vmatprep.subr.bf16.mxu0 %v4305_v56 }
 0x1b3   : > { %v1485_v62 = vmul.f32 0.2, %v3059_v32  ;;  %v3061_v20 = vadd.f32 %v1413_v33, %v4396_v39  ;;  %2177 = vmatprep.mubr.bf16.mxu0 %v1601_v28 }
 0x1b4   : > { %v1488_v47 = vmul.f32 0.2, %v3060_v37  ;;  %2178 = vmatmul.mubr.bf16.gmra.mrb[36].mxu0 %v1600_v61  ;;  %v1548_v45 = vmax.f32 %v3058_v26, %v1484_v18 }
 0x1b5   : > { %v1489_v21 = vmul.f32 0.2, %v3061_v20  ;;  %2911 = vmatpush3.bf16.msra.mxu0 %v4319_v5  ;;  %v1549_v58 = vmax.f32 %v3059_v32, %v1485_v62 }
 0x1b6   : > { %v1552_v53 = vmax.f32 %v3060_v37, %v1488_v47  ;;  %2912 = vmatprep.subr.bf16.mxu0 %v4321_v12 }
 0x1b7   : > { %v1553_v49 = vmax.f32 %v3061_v20, %v1489_v21  ;;  %v1417_v48 = vpop.f32.mrb[44].mxu1 }
 0x1b8   : > { %v3062_v44 = vadd.f32 %v1417_v48, %v4393_v10  ;;  %v1419_v57 = vpop.f32.mrb[45].mxu1  ;;  %v1604_v56 = vpack.c.bf16 %v1552_v53, %v1548_v45 }
 0x1b9   : > { %v3063_v29 = vadd.f32 %v1419_v57, %v4396_v39  ;;  %v1421_v46 = vpop.f32.mrb[46].mxu1  ;;  %v1605_v50 = vpack.c.bf16 %v1553_v49, %v1549_v58  ;;  %2913 = vmatpush3.bf16.msra.mxu0 %v4333_v22 }
 0x1ba   : > { %v1492_v54 = vmul.f32 0.2, %v3062_v44  ;;  %v3064_v5 = vadd.f32 %v1421_v46, %v4393_v10  ;;  %v1423_v23 = vpop.f32.mrb[47].mxu1  ;;  %2914 = vmatprep.subr.bf16.mxu0 %v4337_v41 }
 0x1bb   : > { %v1493_v12 = vmul.f32 0.2, %v3063_v29  ;;  %v3065_v25 = vadd.f32 %v1423_v23, %v4396_v39  ;;  %2187 = vmatprep.mubr.bf16.mxu0 %v1605_v50 }
 0x1bc   : > { %v1496_v51 = vmul.f32 0.2, %v3064_v5  ;;  %2188 = vmatmul.mubr.bf16.gmra.mrb[40].mxu0 %v1604_v56  ;;  %v1556_v55 = vmax.f32 %v3062_v44, %v1492_v54 }
 0x1bd   : > { %v1497_v30 = vmul.f32 0.2, %v3065_v25  ;;  %2915 = vmatpush3.bf16.msra.mxu0 %v4351_v38  ;;  %v1557_v6 = vmax.f32 %v3063_v29, %v1493_v12 }
 0x1be   : > { %v1560_v52 = vmax.f32 %v3064_v5, %v1496_v51 }
 0x1bf   : > { %v1561_v59 = vmax.f32 %v3065_v25, %v1497_v30  ;;  %v1427_v22 = vpop.f32.mrb[48].mxu1 }
 0x1c0   : > { %v3066_v36 = vadd.f32 %v1427_v22, %v4393_v10  ;;  %v1429_v60 = vpop.f32.mrb[49].mxu1  ;;  %v1608_v24 = vpack.c.bf16 %v1560_v52, %v1556_v55 }
 0x1c1   : > { %v3067_v41 = vadd.f32 %v1429_v60, %v4396_v39  ;;  %v1431_v2 = vpop.f32.mrb[50].mxu1  ;;  %v1609_v63 = vpack.c.bf16 %v1561_v59, %v1557_v6 }
 0x1c2   : > { %v1500_v1 = vmul.f32 0.2, %v3066_v36  ;;  %v3068_v3 = vadd.f32 %v1431_v2, %v4393_v10  ;;  %v1433_v35 = vpop.f32.mrb[51].mxu1 }
 0x1c3   : > { %v1501_v7 = vmul.f32 0.2, %v3067_v41  ;;  %v3069_v38 = vadd.f32 %v1433_v35, %v4396_v39  ;;  %2197 = vmatprep.mubr.bf16.mxu0 %v1609_v63 }
 0x1c4   : > { %v1504_v4 = vmul.f32 0.2, %v3068_v3  ;;  %2198 = vmatmul.mubr.bf16.gmra.mrb[44].mxu0 %v1608_v24  ;;  %v1564_v11 = vmax.f32 %v3066_v36, %v1500_v1 }
 0x1c5   : > { %v1505_v9 = vmul.f32 0.2, %v3069_v38  ;;  %v1565_v8 = vmax.f32 %v3067_v41, %v1501_v7 }
 0x1c6   : > { %v1568_v40 = vmax.f32 %v3068_v3, %v1504_v4 }
 0x1c7   : > { %v1569_v13 = vmax.f32 %v3069_v38, %v1505_v9  ;;  %v1437_v31 = vpop.f32.mrb[52].mxu1 }
 0x1c8   : > { %v3070_v16 = vadd.f32 %v1437_v31, %v4393_v10  ;;  %v1439_v14 = vpop.f32.mrb[53].mxu1  ;;  %v1612_v42 = vpack.c.bf16 %v1568_v40, %v1564_v11  ;;  %v3451_v40 = vld [vmem:[#allocation2 + $0x68] sm:$0xff]   ;;  %v3456_v31 = vld [vmem:[#allocation2 + $0x38] sm:$0xff]  }
 0x1c9   : > { %v3071_v19 = vadd.f32 %v1439_v14, %v4396_v39  ;;  %v1441_v15 = vpop.f32.mrb[54].mxu1  ;;  %v1613_v26 = vpack.c.bf16 %v1569_v13, %v1565_v8  ;;  %v3452_v8 = vld [vmem:[#allocation2 + $0x28] sm:$0xff]   ;;  %2916 = vmatprep.subr.bf16.mxu0 %v3451_v40  ;;  %2975 = vmatprep.subr.bf16.mxu1 %v3451_v40  ;;  %v3455_v13 = vld [vmem:[#allocation2 + $0x78] sm:$0xff]  }
 0x1ca   : > { %v1508_v43 = vmul.f32 0.2, %v3070_v16  ;;  %v3072_v61 = vadd.f32 %v1441_v15, %v4393_v10  ;;  %v1443_v32 = vpop.f32.mrb[55].mxu1  ;;  %2917 = vmatpush3.bf16.msra.mxu0 %v3452_v8  ;;  %2983 = vmatpush3.bf16.msra.mxu1 %v3452_v8 }
 0x1cb   : > { %v1509_v17 = vmul.f32 0.2, %v3071_v19  ;;  %v3073_v28 = vadd.f32 %v1443_v32, %v4396_v39  ;;  %2207 = vmatprep.mubr.bf16.mxu0 %v1613_v26 }
 0x1cc   : > { %v1512_v18 = vmul.f32 0.2, %v3072_v61  ;;  %2208 = vmatmul.mubr.bf16.gmra.mrb[48].mxu0 %v1612_v42  ;;  %v1572_v33 = vmax.f32 %v3070_v16, %v1508_v43  ;;  %v1690_v16 = vld [vmem:[%s4570_s4] sm:$0x3] }
 0x1cd   : > { %v1513_v37 = vmul.f32 0.2, %v3073_v28  ;;  %v1573_v20 = vmax.f32 %v3071_v19, %v1509_v17  ;;  %v4444_v14 = vrot.slane %v1690_v16, %v516_v34  ;;  %v4448_v42 = vrot.slane %v1690_v16, %v520_v27 }
 0x1ce   : > { %v1576_v62 = vmax.f32 %v3072_v61, %v1512_v18 }
 0x1cf   : > { %v1577_v47 = vmax.f32 %v3073_v28, %v1513_v37  ;;  %v1447_v21 = vpop.f32.mrb[56].mxu1 }
 0x1d0   : > { %v3074_v45 = vadd.f32 %v1447_v21, %v4393_v10  ;;  %v1449_v53 = vpop.f32.mrb[57].mxu1  ;;  %v1616_v58 = vpack.c.bf16 %v1576_v62, %v1572_v33 }
 0x1d1   : > { %v3075_v49 = vadd.f32 %v1449_v53, %v4396_v39  ;;  %v1451_v48 = vpop.f32.mrb[58].mxu1  ;;  %v1617_v44 = vpack.c.bf16 %v1577_v47, %v1573_v20 }
 0x1d2   : > { %v1516_v57 = vmul.f32 0.2, %v3074_v45  ;;  %v3076_v56 = vadd.f32 %v1451_v48, %v4393_v10  ;;  %v1453_v29 = vpop.f32.mrb[59].mxu1 }
 0x1d3   : > { %v1517_v46 = vmul.f32 0.2, %v3075_v49  ;;  %v3077_v50 = vadd.f32 %v1453_v29, %v4396_v39  ;;  %2217 = vmatprep.mubr.bf16.mxu0 %v1617_v44 }
 0x1d4   : > { %v1520_v54 = vmul.f32 0.2, %v3076_v56  ;;  %2218 = vmatmul.mubr.bf16.gmra.mrb[52].mxu0 %v1616_v58  ;;  %v1580_v23 = vmax.f32 %v3074_v45, %v1516_v57 }
 0x1d5   : > { %v1521_v5 = vmul.f32 0.2, %v3077_v50  ;;  %v1581_v25 = vmax.f32 %v3075_v49, %v1517_v46 }
 0x1d6   : > { %v1584_v12 = vmax.f32 %v3076_v56, %v1520_v54 }
 0x1d7   : > { %v1585_v51 = vmax.f32 %v3077_v50, %v1521_v5  ;;  %v1457_v30 = vpop.f32.mrb[60].mxu1 }
 0x1d8   : > { %v3078_v55 = vadd.f32 %v1457_v30, %v4393_v10  ;;  %v1459_v52 = vpop.f32.mrb[61].mxu1  ;;  %v1620_v6 = vpack.c.bf16 %v1584_v12, %v1580_v23 }
 0x1d9   : > { %v3079_v59 = vadd.f32 %v1459_v52, %v4396_v39  ;;  %v1461_v22 = vpop.f32.mrb[62].mxu1  ;;  %v1621_v36 = vpack.c.bf16 %v1585_v51, %v1581_v25 }
 0x1da   : > { %v1524_v60 = vmul.f32 0.2, %v3078_v55  ;;  %v3080_v24 = vadd.f32 %v1461_v22, %v4393_v10  ;;  %v1463_v41 = vpop.f32.mrb[63].mxu1  ;;  %v3453_v10 = vld [vmem:[#allocation2 + $0x70] sm:$0xff]  }
 0x1db   : > { %v1525_v2 = vmul.f32 0.2, %v3079_v59  ;;  %v3081_v63 = vadd.f32 %v1463_v41, %v4396_v39  ;;  %2227 = vmatprep.mubr.bf16.mxu0 %v1621_v36  ;;  %v3454_v39 = vld [vmem:[#allocation2 + $0x30] sm:$0xff]   ;;  %2918 = vmatprep.subr.bf16.mxu0 %v3453_v10 }
 0x1dc   : > { %v1528_v1 = vmul.f32 0.2, %v3080_v24  ;;  %2228 = vmatmul.mubr.bf16.gmra.mrb[56].mxu0 %v1620_v6  ;;  %v1588_v35 = vmax.f32 %v3078_v55, %v1524_v60  ;;  %2976 = vmatprep.subr.bf16.mxu1 %v3453_v10 }
 0x1dd   : > { %v1529_v3 = vmul.f32 0.2, %v3081_v63  ;;  %v1589_v38 = vmax.f32 %v3079_v59, %v1525_v2  ;;  %2919 = vmatpush3.bf16.msra.mxu0 %v3454_v39  ;;  %2984 = vmatpush3.bf16.msra.mxu1 %v3454_v39 }
 0x1de   : > { %v1592_v7 = vmax.f32 %v3080_v24, %v1528_v1  ;;  %2920 = vmatprep.subr.bf16.mxu0 %v3455_v13  ;;  %2977 = vmatprep.subr.bf16.mxu1 %v3455_v13 }
 0x1df   : > { %v1593_v4 = vmax.f32 %v3081_v63, %v1529_v3 }
 0x1e0   : > { %v1624_v9 = vpack.c.bf16 %v1592_v7, %v1588_v35 }
 0x1e1   : > { %v1625_v11 = vpack.c.bf16 %v1593_v4, %v1589_v38  ;;  %2921 = vmatpush3.bf16.msra.mxu0 %v3456_v31  ;;  %2985 = vmatpush3.bf16.msra.mxu1 %v3456_v31 }
 0x1e3   : > { %2237 = vmatprep.mubr.bf16.mxu0 %v1625_v11 }
 0x1e4   : > { %2238 = vmatmul.mubr.bf16.gmra.mrb[60].mxu0 %v1624_v9 }
 0x27f   : > { %v2169_v19 = vpop.f32.mrb[32].mxu0 }
 0x280   : > { %v3082_v15 = vadd.f32 %v2169_v19, %v4444_v14  ;;  %v2171_v26 = vpop.f32.mrb[33].mxu0 }
 0x281   : > { %v3083_v43 = vadd.f32 %v2171_v26, %v4448_v42  ;;  %v2173_v61 = vpop.f32.mrb[34].mxu0 }
 0x282   : > { %v2248_v32 = vmul.f32 0.2, %v3082_v15  ;;  %v3084_v17 = vadd.f32 %v2173_v61, %v4444_v14  ;;  %v2175_v28 = vpop.f32.mrb[35].mxu0 }
 0x283   : > { %v2249_v0 = vmul.f32 0.2, %v3083_v43  ;;  %v3085_v34 = vadd.f32 %v2175_v28, %v4448_v42 }
 0x284   : > { %v2280_v27 = vmax.f32 %v3082_v15, %v2248_v32  ;;  %v2250_v18 = vmul.f32 0.2, %v3084_v17 }
 0x285   : > { %v2281_v37 = vmax.f32 %v3083_v43, %v2249_v0  ;;  %v2251_v33 = vmul.f32 0.2, %v3085_v34 }
 0x286   : > { %2312 = vst [vmem:[%s4457_s22] sm:$0xff] %v2280_v27  ;;  %v2282_v62 = vmax.f32 %v3084_v17, %v2250_v18 }
 0x287   : > { %2313 = vst [vmem:[%s4457_s22 + $0x8] sm:$0xff] %v2281_v37  ;;  %v2283_v20 = vmax.f32 %v3085_v34, %v2251_v33  ;;  %v2179_v47 = vpop.f32.mrb[36].mxu0 }
 0x288   : > { %2314 = vst [vmem:[%s4457_s22 + $0x10] sm:$0xff] %v2282_v62  ;;  %v2344_v21 = vpack.c.bf16 %v2282_v62, %v2280_v27  ;;  %v3086_v45 = vadd.f32 %v2179_v47, %v4444_v14  ;;  %v2181_v53 = vpop.f32.mrb[37].mxu0 }
 0x289   : > { %2315 = vst [vmem:[%s4457_s22 + $0x18] sm:$0xff] %v2283_v20  ;;  %v3087_v58 = vadd.f32 %v2181_v53, %v4448_v42  ;;  %v2183_v49 = vpop.f32.mrb[38].mxu0  ;;  %v2345_v48 = vpack.c.bf16 %v2283_v20, %v2281_v37 }
 0x28a   : > { %v2252_v44 = vmul.f32 0.2, %v3086_v45  ;;  %v3088_v57 = vadd.f32 %v2183_v49, %v4444_v14  ;;  %v2185_v56 = vpop.f32.mrb[39].mxu0 }
 0x28b   : > { %v2253_v29 = vmul.f32 0.2, %v3087_v58  ;;  %v3089_v46 = vadd.f32 %v2185_v56, %v4448_v42  ;;  %2527 = vmatprep.mubr.bf16.mxu0 %v2345_v48 }
 0x28c   : > { %v2284_v50 = vmax.f32 %v3086_v45, %v2252_v44  ;;  %v2254_v54 = vmul.f32 0.2, %v3088_v57  ;;  %2528 = vmatmul.mubr.bf16.vlgmr.msra.gmra.mrb[64].mxu0 %v2344_v21 }
 0x28d   : > { %v2285_v5 = vmax.f32 %v3087_v58, %v2253_v29  ;;  %v2255_v23 = vmul.f32 0.2, %v3089_v46 }
 0x28e   : > { %2316 = vst [vmem:[%s4457_s22 + $0x20] sm:$0xff] %v2284_v50  ;;  %v2286_v12 = vmax.f32 %v3088_v57, %v2254_v54 }
 0x28f   : > { %2317 = vst [vmem:[%s4457_s22 + $0x28] sm:$0xff] %v2285_v5  ;;  %v2287_v25 = vmax.f32 %v3089_v46, %v2255_v23  ;;  %v2189_v51 = vpop.f32.mrb[40].mxu0 }
 0x290   : > { %2318 = vst [vmem:[%s4457_s22 + $0x30] sm:$0xff] %v2286_v12  ;;  %v3090_v30 = vadd.f32 %v2189_v51, %v4444_v14  ;;  %v2191_v55 = vpop.f32.mrb[41].mxu0  ;;  %v2346_v52 = vpack.c.bf16 %v2286_v12, %v2284_v50 }
 0x291   : > { %2319 = vst [vmem:[%s4457_s22 + $0x38] sm:$0xff] %v2287_v25  ;;  %v3091_v6 = vadd.f32 %v2191_v55, %v4448_v42  ;;  %v2193_v59 = vpop.f32.mrb[42].mxu0  ;;  %v2347_v22 = vpack.c.bf16 %v2287_v25, %v2285_v5 }
 0x292   : > { %v2256_v36 = vmul.f32 0.2, %v3090_v30  ;;  %v3092_v60 = vadd.f32 %v2193_v59, %v4444_v14  ;;  %v2195_v24 = vpop.f32.mrb[43].mxu0 }
 0x293   : > { %v2257_v41 = vmul.f32 0.2, %v3091_v6  ;;  %v3093_v2 = vadd.f32 %v2195_v24, %v4448_v42  ;;  %2535 = vmatprep.mubr.bf16.mxu0 %v2347_v22 }
 0x294   : > { %v2288_v63 = vmax.f32 %v3090_v30, %v2256_v36  ;;  %v2258_v1 = vmul.f32 0.2, %v3092_v60  ;;  %2536 = vmatmul.mubr.bf16.gmra.mrb[68].mxu0 %v2346_v52 }
 0x295   : > { %v2289_v3 = vmax.f32 %v3091_v6, %v2257_v41  ;;  %v2259_v35 = vmul.f32 0.2, %v3093_v2 }
 0x296   : > { %2320 = vst [vmem:[%s4457_s22 + $0x40] sm:$0xff] %v2288_v63  ;;  %v2290_v7 = vmax.f32 %v3092_v60, %v2258_v1 }
 0x297   : > { %2321 = vst [vmem:[%s4457_s22 + $0x48] sm:$0xff] %v2289_v3  ;;  %v2291_v38 = vmax.f32 %v3093_v2, %v2259_v35  ;;  %v2199_v4 = vpop.f32.mrb[44].mxu0 }
 0x298   : > { %2322 = vst [vmem:[%s4457_s22 + $0x50] sm:$0xff] %v2290_v7  ;;  %v2348_v9 = vpack.c.bf16 %v2290_v7, %v2288_v63  ;;  %v3094_v11 = vadd.f32 %v2199_v4, %v4444_v14  ;;  %v2201_v40 = vpop.f32.mrb[45].mxu0 }
 0x299   : > { %2323 = vst [vmem:[%s4457_s22 + $0x58] sm:$0xff] %v2291_v38  ;;  %v3095_v8 = vadd.f32 %v2201_v40, %v4448_v42  ;;  %v2203_v10 = vpop.f32.mrb[46].mxu0  ;;  %v2349_v39 = vpack.c.bf16 %v2291_v38, %v2289_v3 }
 0x29a   : > { %v2260_v13 = vmul.f32 0.2, %v3094_v11  ;;  %v3096_v31 = vadd.f32 %v2203_v10, %v4444_v14  ;;  %v2205_v16 = vpop.f32.mrb[47].mxu0 }
 0x29b   : > { %v2261_v19 = vmul.f32 0.2, %v3095_v8  ;;  %v3097_v15 = vadd.f32 %v2205_v16, %v4448_v42  ;;  %2543 = vmatprep.mubr.bf16.mxu1 %v2349_v39 }
 0x29c   : > { %v2292_v26 = vmax.f32 %v3094_v11, %v2260_v13  ;;  %v2262_v43 = vmul.f32 0.2, %v3096_v31  ;;  %2544 = vmatmul.mubr.bf16.vlgmr.msra.gmra.mrb[64].mxu1 %v2348_v9 }
 0x29d   : > { %v2293_v61 = vmax.f32 %v3095_v8, %v2261_v19  ;;  %v2263_v32 = vmul.f32 0.2, %v3097_v15 }
 0x29e   : > { %2324 = vst [vmem:[%s4457_s22 + $0x60] sm:$0xff] %v2292_v26  ;;  %v2294_v17 = vmax.f32 %v3096_v31, %v2262_v43 }
 0x29f   : > { %2325 = vst [vmem:[%s4457_s22 + $0x68] sm:$0xff] %v2293_v61  ;;  %v2295_v28 = vmax.f32 %v3097_v15, %v2263_v32  ;;  %v2209_v0 = vpop.f32.mrb[48].mxu0 }
 0x2a0   : > { %2326 = vst [vmem:[%s4457_s22 + $0x70] sm:$0xff] %v2294_v17  ;;  %v3098_v34 = vadd.f32 %v2209_v0, %v4444_v14  ;;  %v2211_v27 = vpop.f32.mrb[49].mxu0  ;;  %v2350_v18 = vpack.c.bf16 %v2294_v17, %v2292_v26 }
 0x2a1   : > { %2327 = vst [vmem:[%s4457_s22 + $0x78] sm:$0xff] %v2295_v28  ;;  %v3099_v37 = vadd.f32 %v2211_v27, %v4448_v42  ;;  %v2213_v33 = vpop.f32.mrb[50].mxu0  ;;  %v2351_v62 = vpack.c.bf16 %v2295_v28, %v2293_v61 }
 0x2a2   : > { %v2264_v20 = vmul.f32 0.2, %v3098_v34  ;;  %v3100_v47 = vadd.f32 %v2213_v33, %v4444_v14  ;;  %v2215_v21 = vpop.f32.mrb[51].mxu0 }
 0x2a3   : > { %v2265_v45 = vmul.f32 0.2, %v3099_v37  ;;  %v3101_v53 = vadd.f32 %v2215_v21, %v4448_v42  ;;  %2551 = vmatprep.mubr.bf16.mxu1 %v2351_v62 }
 0x2a4   : > { %v2296_v58 = vmax.f32 %v3098_v34, %v2264_v20  ;;  %v2266_v49 = vmul.f32 0.2, %v3100_v47  ;;  %2552 = vmatmul.mubr.bf16.gmra.mrb[68].mxu1 %v2350_v18 }
 0x2a5   : > { %v2297_v48 = vmax.f32 %v3099_v37, %v2265_v45  ;;  %v2267_v44 = vmul.f32 0.2, %v3101_v53 }
 0x2a6   : > { %2328 = vst [vmem:[%s4457_s22 + $0x80] sm:$0xff] %v2296_v58  ;;  %v2298_v57 = vmax.f32 %v3100_v47, %v2266_v49 }
 0x2a7   : > { %2329 = vst [vmem:[%s4457_s22 + $0x88] sm:$0xff] %v2297_v48  ;;  %v2299_v56 = vmax.f32 %v3101_v53, %v2267_v44  ;;  %v2219_v29 = vpop.f32.mrb[52].mxu0 }
 0x2a8   : > { %2330 = vst [vmem:[%s4457_s22 + $0x90] sm:$0xff] %v2298_v57  ;;  %v3102_v46 = vadd.f32 %v2219_v29, %v4444_v14  ;;  %v2221_v50 = vpop.f32.mrb[53].mxu0  ;;  %v2352_v54 = vpack.c.bf16 %v2298_v57, %v2296_v58 }
 0x2a9   : > { %2331 = vst [vmem:[%s4457_s22 + $0x98] sm:$0xff] %v2299_v56  ;;  %v3103_v5 = vadd.f32 %v2221_v50, %v4448_v42  ;;  %v2223_v23 = vpop.f32.mrb[54].mxu0  ;;  %v2353_v12 = vpack.c.bf16 %v2299_v56, %v2297_v48 }
 0x2aa   : > { %v2268_v25 = vmul.f32 0.2, %v3102_v46  ;;  %v3104_v51 = vadd.f32 %v2223_v23, %v4444_v14  ;;  %v2225_v30 = vpop.f32.mrb[55].mxu0 }
 0x2ab   : > { %v2269_v55 = vmul.f32 0.2, %v3103_v5  ;;  %v3105_v52 = vadd.f32 %v2225_v30, %v4448_v42  ;;  %2559 = vmatprep.mubr.bf16.mxu1 %v2353_v12 }
 0x2ac   : > { %v2300_v6 = vmax.f32 %v3102_v46, %v2268_v25  ;;  %v2270_v59 = vmul.f32 0.2, %v3104_v51  ;;  %2560 = vmatmul.mubr.bf16.gmra.mrb[72].mxu1 %v2352_v54 }
 0x2ad   : > { %v2301_v22 = vmax.f32 %v3103_v5, %v2269_v55  ;;  %v2271_v36 = vmul.f32 0.2, %v3105_v52 }
 0x2ae   : > { %2332 = vst [vmem:[%s4457_s22 + $0xa0] sm:$0xff] %v2300_v6  ;;  %v2302_v60 = vmax.f32 %v3104_v51, %v2270_v59 }
 0x2af   : > { %2333 = vst [vmem:[%s4457_s22 + $0xa8] sm:$0xff] %v2301_v22  ;;  %v2303_v24 = vmax.f32 %v3105_v52, %v2271_v36  ;;  %v2229_v41 = vpop.f32.mrb[56].mxu0 }
 0x2b0   : > { %2334 = vst [vmem:[%s4457_s22 + $0xb0] sm:$0xff] %v2302_v60  ;;  %v3106_v2 = vadd.f32 %v2229_v41, %v4444_v14  ;;  %v2231_v63 = vpop.f32.mrb[57].mxu0  ;;  %v2354_v1 = vpack.c.bf16 %v2302_v60, %v2300_v6 }
 0x2b1   : > { %2335 = vst [vmem:[%s4457_s22 + $0xb8] sm:$0xff] %v2303_v24  ;;  %v3107_v3 = vadd.f32 %v2231_v63, %v4448_v42  ;;  %v2233_v35 = vpop.f32.mrb[58].mxu0  ;;  %v2355_v7 = vpack.c.bf16 %v2303_v24, %v2301_v22 }
 0x2b2   : > { %v2272_v38 = vmul.f32 0.2, %v3106_v2  ;;  %v3108_v4 = vadd.f32 %v2233_v35, %v4444_v14  ;;  %v2235_v9 = vpop.f32.mrb[59].mxu0 }
 0x2b3   : > { %v2273_v11 = vmul.f32 0.2, %v3107_v3  ;;  %v3109_v40 = vadd.f32 %v2235_v9, %v4448_v42  ;;  %2567 = vmatprep.mubr.bf16.mxu1 %v2355_v7 }
 0x2b4   : > { %v2304_v8 = vmax.f32 %v3106_v2, %v2272_v38  ;;  %v2274_v10 = vmul.f32 0.2, %v3108_v4  ;;  %2568 = vmatmul.mubr.bf16.gmra.mrb[76].mxu1 %v2354_v1 }
 0x2b5   : > { %v2305_v39 = vmax.f32 %v3107_v3, %v2273_v11  ;;  %v2275_v13 = vmul.f32 0.2, %v3109_v40 }
 0x2b6   : > { %2336 = vst [vmem:[%s4457_s22 + $0xc0] sm:$0xff] %v2304_v8  ;;  %v2306_v31 = vmax.f32 %v3108_v4, %v2274_v10 }
 0x2b7   : > { %2337 = vst [vmem:[%s4457_s22 + $0xc8] sm:$0xff] %v2305_v39  ;;  %v2307_v16 = vmax.f32 %v3109_v40, %v2275_v13  ;;  %v2239_v19 = vpop.f32.mrb[60].mxu0 }
 0x2b8   : > { %2338 = vst [vmem:[%s4457_s22 + $0xd0] sm:$0xff] %v2306_v31  ;;  %v3110_v15 = vadd.f32 %v2239_v19, %v4444_v14  ;;  %v2241_v26 = vpop.f32.mrb[61].mxu0  ;;  %v2356_v43 = vpack.c.bf16 %v2306_v31, %v2304_v8 }
 0x2b9   : > { %2339 = vst [vmem:[%s4457_s22 + $0xd8] sm:$0xff] %v2307_v16  ;;  %v3111_v61 = vadd.f32 %v2241_v26, %v4448_v42  ;;  %v2243_v32 = vpop.f32.mrb[62].mxu0  ;;  %v2357_v17 = vpack.c.bf16 %v2307_v16, %v2305_v39 }
 0x2ba   : > { %v2276_v28 = vmul.f32 0.2, %v3110_v15  ;;  %v3112_v0 = vadd.f32 %v2243_v32, %v4444_v14  ;;  %v2245_v34 = vpop.f32.mrb[63].mxu0 }
 0x2bb   : > { %v2277_v27 = vmul.f32 0.2, %v3111_v61  ;;  %v3113_v18 = vadd.f32 %v2245_v34, %v4448_v42  ;;  %2575 = vmatprep.mubr.bf16.mxu1 %v2357_v17  ;;  %v4524_v42 = vld [vmem:[%s4572_s6] ss:$0 sm:$0xff] }
 0x2bc   : > { %v2308_v37 = vmax.f32 %v3110_v15, %v2276_v28  ;;  %v2278_v33 = vmul.f32 0.2, %v3112_v0  ;;  %2576 = vmatmul.mubr.bf16.gmra.mrb[80].mxu1 %v2356_v43 }
 0x2bd   : > { %v2309_v62 = vmax.f32 %v3111_v61, %v2277_v27  ;;  %v2279_v20 = vmul.f32 0.2, %v3113_v18 }
 0x2be   : > { %2340 = vst [vmem:[%s4457_s22 + $0xe0] sm:$0xff] %v2308_v37  ;;  %v2310_v47 = vmax.f32 %v3112_v0, %v2278_v33 }
 0x2bf   : > { %2341 = vst [vmem:[%s4457_s22 + $0xe8] sm:$0xff] %v2309_v62  ;;  %v2311_v21 = vmax.f32 %v3113_v18, %v2279_v20 }
 0x2c0   : > { %2342 = vst [vmem:[%s4457_s22 + $0xf0] sm:$0xff] %v2310_v47  ;;  %v2358_v45 = vpack.c.bf16 %v2310_v47, %v2308_v37 }
 0x2c1   : > { %2343 = vst [vmem:[%s4457_s22 + $0xf8] sm:$0xff] %v2311_v21  ;;  %v2359_v14 = vpack.c.bf16 %v2311_v21, %v2309_v62 }
 0x2c3   : > { %2583 = vmatprep.mubr.bf16.mxu1 %v2359_v14 }
 0x2c4   : > { %2584 = vmatmul.mubr.bf16.gmra.mrb[84].mxu1 %v2358_v45 }
 0x35f   : > { %v2922_v53 = vpop.f32.mrb[64].mxu0 }
 0x360   : > { %v2923_v58 = vpop.f32.mrb[65].mxu0 }
 0x361   : > { %v2924_v49 = vadd.f32 %v2923_v58, %v2922_v53  ;;  %v2925_v48 = vpop.f32.mrb[66].mxu0 }
 0x362   : > { %v2926_v44 = vpop.f32.mrb[67].mxu0 }
 0x363   : > { %v2530_v57 = vadd.f32 %v2924_v49, %v4524_v42  ;;  %v2927_v56 = vadd.f32 %v2926_v44, %v2925_v48 }
 0x365   : > { %2592 = vst [vmem:[%s4529_s30] sm:$0xff] %v2530_v57  ;;  %v2533_v29 = vadd.f32 %v2927_v56, %v4524_v42 }
 0x367   : > { %2593 = vst [vmem:[%s4529_s30 + $0x8] sm:$0xff] %v2533_v29  ;;  %v2928_v46 = vpop.f32.mrb[68].mxu0 }
 0x368   : > { %v2929_v50 = vpop.f32.mrb[69].mxu0 }
 0x369   : > { %v2930_v54 = vadd.f32 %v2929_v50, %v2928_v46  ;;  %v2931_v5 = vpop.f32.mrb[70].mxu0 }
 0x36a   : > { %v2932_v23 = vpop.f32.mrb[71].mxu0 }
 0x36b   : > { %v2538_v12 = vadd.f32 %v2930_v54, %v4524_v42  ;;  %v2933_v25 = vadd.f32 %v2932_v23, %v2931_v5 }
 0x36d   : > { %2594 = vst [vmem:[%s4529_s30 + $0x10] sm:$0xff] %v2538_v12  ;;  %v2541_v51 = vadd.f32 %v2933_v25, %v4524_v42 }
 0x36f   : > { %2595 = vst [vmem:[%s4529_s30 + $0x18] sm:$0xff] %v2541_v51  ;;  %v2934_v30 = vpop.f32.mrb[64].mxu1 }
 0x370   : > { %v2935_v55 = vpop.f32.mrb[65].mxu1 }
 0x371   : > { %v2936_v52 = vadd.f32 %v2935_v55, %v2934_v30  ;;  %v2937_v6 = vpop.f32.mrb[66].mxu1 }
 0x372   : > { %v2938_v59 = vpop.f32.mrb[67].mxu1 }
 0x373   : > { %v2546_v22 = vadd.f32 %v2936_v52, %v4524_v42  ;;  %v2939_v36 = vadd.f32 %v2938_v59, %v2937_v6 }
 0x375   : > { %2596 = vst [vmem:[%s4529_s30 + $0x20] sm:$0xff] %v2546_v22  ;;  %v2549_v60 = vadd.f32 %v2939_v36, %v4524_v42 }
 0x377   : > { %2597 = vst [vmem:[%s4529_s30 + $0x28] sm:$0xff] %v2549_v60  ;;  %v2940_v24 = vpop.f32.mrb[68].mxu1 }
 0x378   : > { %v2941_v41 = vpop.f32.mrb[69].mxu1 }
 0x379   : > { %v2942_v2 = vadd.f32 %v2941_v41, %v2940_v24  ;;  %v2943_v63 = vpop.f32.mrb[70].mxu1 }
 0x37a   : > { %v2944_v1 = vpop.f32.mrb[71].mxu1 }
 0x37b   : > { %v2554_v3 = vadd.f32 %v2942_v2, %v4524_v42  ;;  %v2945_v35 = vadd.f32 %v2944_v1, %v2943_v63 }
 0x37d   : > { %2598 = vst [vmem:[%s4529_s30 + $0x30] sm:$0xff] %v2554_v3  ;;  %v2557_v7 = vadd.f32 %v2945_v35, %v4524_v42 }
 0x37f   : > { %2599 = vst [vmem:[%s4529_s30 + $0x38] sm:$0xff] %v2557_v7  ;;  %v2946_v38 = vpop.f32.mrb[72].mxu1 }
 0x380   : > { %v2947_v4 = vpop.f32.mrb[73].mxu1 }
 0x381   : > { %v2948_v9 = vadd.f32 %v2947_v4, %v2946_v38  ;;  %v2949_v11 = vpop.f32.mrb[74].mxu1 }
 0x382   : > { %v2950_v40 = vpop.f32.mrb[75].mxu1 }
 0x383   : > { %v2562_v8 = vadd.f32 %v2948_v9, %v4524_v42  ;;  %v2951_v10 = vadd.f32 %v2950_v40, %v2949_v11 }
 0x385   : > { %2600 = vst [vmem:[%s4529_s30 + $0x40] sm:$0xff] %v2562_v8  ;;  %v2565_v39 = vadd.f32 %v2951_v10, %v4524_v42 }
 0x387   : > { %2601 = vst [vmem:[%s4529_s30 + $0x48] sm:$0xff] %v2565_v39  ;;  %v2952_v13 = vpop.f32.mrb[76].mxu1 }
 0x388   : > { %v2953_v31 = vpop.f32.mrb[77].mxu1 }
 0x389   : > { %v2954_v16 = vadd.f32 %v2953_v31, %v2952_v13  ;;  %v2955_v19 = vpop.f32.mrb[78].mxu1 }
 0x38a   : > { %v2956_v15 = vpop.f32.mrb[79].mxu1 }
 0x38b   : > { %v2570_v26 = vadd.f32 %v2954_v16, %v4524_v42  ;;  %v2957_v43 = vadd.f32 %v2956_v15, %v2955_v19 }
 0x38d   : > { %2602 = vst [vmem:[%s4529_s30 + $0x50] sm:$0xff] %v2570_v26  ;;  %v2573_v61 = vadd.f32 %v2957_v43, %v4524_v42 }
 0x38f   : > { %2603 = vst [vmem:[%s4529_s30 + $0x58] sm:$0xff] %v2573_v61  ;;  %v2958_v32 = vpop.f32.mrb[80].mxu1 }
 0x390   : > { %v2959_v17 = vpop.f32.mrb[81].mxu1 }
 0x391   : > { %v2960_v28 = vadd.f32 %v2959_v17, %v2958_v32  ;;  %v2961_v0 = vpop.f32.mrb[82].mxu1 }
 0x392   : > { %v2962_v34 = vpop.f32.mrb[83].mxu1 }
 0x393   : > { %v2578_v27 = vadd.f32 %v2960_v28, %v4524_v42  ;;  %v2963_v18 = vadd.f32 %v2962_v34, %v2961_v0 }
 0x395   : > { %2604 = vst [vmem:[%s4529_s30 + $0x60] sm:$0xff] %v2578_v27  ;;  %v2581_v37 = vadd.f32 %v2963_v18, %v4524_v42 }
 0x397   : > { %2605 = vst [vmem:[%s4529_s30 + $0x68] sm:$0xff] %v2581_v37  ;;  %v2964_v33 = vpop.f32.mrb[84].mxu1 }
 0x398   : > { %v2965_v62 = vpop.f32.mrb[85].mxu1 }
 0x399   : > { %v2966_v20 = vadd.f32 %v2965_v62, %v2964_v33  ;;  %v2967_v47 = vpop.f32.mrb[86].mxu1 }
 0x39a   : > { %v2968_v21 = vpop.f32.mrb[87].mxu1 }
 0x39b   : > { %v2586_v45 = vadd.f32 %v2966_v20, %v4524_v42  ;;  %v2969_v14 = vadd.f32 %v2968_v21, %v2967_v47 }
 0x39d   : > { %2606 = vst [vmem:[%s4529_s30 + $0x70] sm:$0xff] %v2586_v45  ;;  %v2589_v53 = vadd.f32 %v2969_v14, %v4524_v42 }
 0x39f   : > { %2607 = vst [vmem:[%s4529_s30 + $0x78] sm:$0xff] %v2589_v53 }
 0x3a0 PF: > { %s20_s27 = sadd.s32 1, %s3495_s27  }
 0x3a1   : > { %p17_p3 = scmp.ge.s32.totalorder %s20_s27, 4  }
 0x3a3   :  { %19 = sbr.rel (!%p17_p3) target bundleno = 1 (0x1), region = 95 }
 0x3aa   :  { %2649 = vsyncpa [#allocation3], 1 }
 0x3ab   :  { %2651 = vsyncpa [#allocation3 + $0x1], 1 }

</bundles_post_ra>
